<compile_context>
chip_gen: v5e
topology: v5e:2x2
jax: 0.10.0
libtpu: 0.0.40
codegen_flags: <defaults>
</compile_context>

<pallas_src>
import math
import numpy as np
import jax
import jax.numpy as jnp
from jax.experimental import pallas as pl
from jax.experimental.pallas import tpu as pltpu

BN_EPS = 1e-5
_HI = jax.lax.Precision.HIGHEST  # reference only


def make_timm_sed_kernel(n_frames, tile_mels, n_mels, pad_rows, n_classes):
    """Kernel closure over the static shape parameters."""
    T, tM, M, K = n_frames, tile_mels, n_mels, n_classes
    inv_mels = 1.0 / float(M)

    def kernel(x_ref, bn_ref, wenc_ref, benc_ref, w1_ref, b1_ref,
               wac_ref, bac_ref, z_ref, natt_ref, cla_ref, h_acc):
        mi = pl.program_id(1)
        last = pl.num_programs(1) - 1

        # ---- bn0 (inference, folded per-mel scale/shift) on the small x tile;
        #      pad the tiny contraction dim on-chip (C_in stays unpadded in HBM)
        xbn = x_ref[0, 0].astype(jnp.float32) * bn_ref[0:1, :] + bn_ref[1:2, :]
        if pad_rows:
            xbn = jnp.concatenate(
                [xbn, jnp.zeros((pad_rows, xbn.shape[1]), jnp.float32)], axis=0)
        xp = xbn.astype(jnp.bfloat16)                        # (Cp, tM*T)

        # ---- stand-in encoder: 1x1 conv C->F as one bf16 MXU matmul, ReLU ----
        enc = jnp.maximum(
            jnp.dot(wenc_ref[...], xp,
                    preferred_element_type=jnp.float32) + benc_ref[...],
            0.0)                                             # (F, tM*T) f32

        # ---- torch.mean(x, dim=2): partial mel sum for this mel block.
        # The grid's "arbitrary" mel axis carries the bulk of the reduction;
        # this short fixed-count unroll over 128-aligned T-wide lane chunks is
        # what lax.fori_loop(..., unroll=True) would emit, with static offsets.
        acc = enc[:, 0:T]
        for j in range(1, tM):
            acc = acc + enc[:, j * T:(j + 1) * T]            # (F, T)

        @pl.when(mi == 0)
        def _init_acc():
            h_acc[...] = acc

        @pl.when(mi > 0)
        def _accumulate():
            h_acc[...] += acc

        # ---- temporal head, once per batch element on the last mel step ----
        @pl.when(mi == last)
        def _head():
            h = h_acc[...] * inv_mels                        # (F, T) f32

            # max_pool1d(3,1,1) + avg_pool1d(3,1,1): neighbours via XLU rolls,
            # edge validity from an in-kernel iota (direction-agnostic compare;
            # the wrap distance is T-1 != 1 because T > 2).
            pos = jax.lax.broadcasted_iota(jnp.int32, (1, T), 1).astype(jnp.float32)
            r1 = pltpu.roll(h, 1, axis=1)
            p1 = pltpu.roll(pos, 1, axis=1)
            r2 = pltpu.roll(h, T - 1, axis=1)
            p2 = pltpu.roll(pos, T - 1, axis=1)
            d1 = p1 - pos
            d2 = p2 - pos
            ok1 = (d1 == 1.0) | (d1 == -1.0)
            ok2 = (d2 == 1.0) | (d2 == -1.0)
            x1 = jnp.maximum(jnp.maximum(jnp.where(ok1, r1, -jnp.inf),
                                         jnp.where(ok2, r2, -jnp.inf)), h)
            x2 = (h + jnp.where(ok1, r1, 0.0)
                  + jnp.where(ok2, r2, 0.0)) * (1.0 / 3.0)   # count_include_pad
            hp = (x1 + x2).astype(jnp.bfloat16)              # (F, T)

            # fc1 + ReLU (bf16 MXU multiplies, f32 accumulation)
            z = jnp.maximum(
                jnp.dot(w1_ref[...], hp,
                        preferred_element_type=jnp.float32) + b1_ref[...],
                0.0)                                         # (F, T) f32
            z_ref[0] = z

            # AttBlockV2: fused att/cla projection (stacked (2K, F) weight)
            logits = jnp.dot(wac_ref[...], z.astype(jnp.bfloat16),
                             preferred_element_type=jnp.float32) + bac_ref[...]
            att = jnp.tanh(logits[:K, :])                    # (K, T)
            cla = jax.nn.sigmoid(logits[K:, :])              # (K, T)

            # softmax over time: tanh bounds |att| <= 1, so exp without
            # max-subtraction is safe (guard: revisit if the activation changes)
            e = jnp.exp(att)
            denom = jnp.sum(e, axis=1, keepdims=True)        # (K, 1)
            natt_ref[0] = e * pl.reciprocal(denom, approx=True)    # EUP
            cla_ref[0] = cla

    return kernel


def _vmem_limit_bytes():
    """Generation-aware scoped-VMEM limit; leaves headroom (v7x: 64 MiB/TC)."""
    try:
        return int(0.75 * pltpu.get_tpu_info().vmem_capacity_bytes)
    except Exception:
        return None  # fall back to the compiler default


def timm_sed_forward(x, params, *, tile_mels=8):
    """x: (B, C_in, T, M) float32. Returns dict mirroring TimmSED.forward."""
    B, C, T, M = x.shape
    F_dim = params["w1"].shape[0]
    K = params["wa"].shape[0]
    assert T % 128 == 0 and T > 2, "frame axis must be a multiple of 128 (and > 2)"
    tM = min(tile_mels, M)
    assert M % tM == 0, "n_mels must be divisible by the mel tile"
    nM = M // tM
    LM = tM * T
    Cp = max(8, ((C + 7) // 8) * 8)      # on-chip (not HBM) contraction padding

    # ---- wrapper-side layout plumbing (cheap XLA ops) ----
    # x: (B, C, T, M) -> (B, nM, C, tM*T), lanes ordered (m_local, t), bf16.
    xt = jnp.transpose(x, (0, 3, 1, 2)).reshape(B, nM, tM, C, T)
    xt = jnp.transpose(xt, (0, 1, 3, 2, 4)).reshape(B, nM, C, LM)
    xt = xt.astype(jnp.bfloat16)

    # bn0 folded to per-mel scale/shift, tiled over t only -> (2, M*T).
    gamma, beta, mean, var = (params["bn"][i] for i in range(4))
    scale = gamma / jnp.sqrt(var + BN_EPS)
    shift = beta - mean * scale
    bn2 = jnp.stack([jnp.repeat(scale, T),
                     jnp.repeat(shift, T)]).astype(jnp.float32)

    # Weights in bf16 (halved DMA / VMEM); only the tiny encoder weight gets
    # the contraction-dim zero padding.  Biases stay f32.
    wenc = params["wenc"].astype(jnp.bfloat16)
    if Cp != C:
        wenc = jnp.pad(wenc, ((0, 0), (0, Cp - C)))
    w1 = params["w1"].astype(jnp.bfloat16)
    wac = jnp.concatenate([params["wa"], params["wc"]], 0).astype(jnp.bfloat16)
    benc = params["benc"].astype(jnp.float32)
    b1 = params["b1"].astype(jnp.float32)
    bac = jnp.concatenate([params["ba"], params["bc"]], 0).astype(jnp.float32)

    kernel = make_timm_sed_kernel(T, tM, M, Cp - C, K)
    const = lambda b, mi: (0, 0)

    z, natt, cla = pl.pallas_call(
        kernel,
        grid=(B, nM),                     # batch parallel, mel = reduction
        in_specs=[
            # x streams per (b, mel-block); everything else stays VMEM-resident.
            # TODO(synk): on v5e consider pipeline_mode=pl.Buffered(3) for x.
            pl.BlockSpec((1, 1, C, LM), lambda b, mi: (b, mi, 0, 0)),
            pl.BlockSpec((2, LM), lambda b, mi: (0, mi)),
            pl.BlockSpec((F_dim, Cp), const),
            pl.BlockSpec((F_dim, 1), const),
            pl.BlockSpec((F_dim, F_dim), const),
            pl.BlockSpec((F_dim, 1), const),
            pl.BlockSpec((2 * K, F_dim), const),
            pl.BlockSpec((2 * K, 1), const),
        ],
        out_specs=[
            pl.BlockSpec((1, F_dim, T), lambda b, mi: (b, 0, 0)),
            pl.BlockSpec((1, K, T), lambda b, mi: (b, 0, 0)),
            pl.BlockSpec((1, K, T), lambda b, mi: (b, 0, 0)),
        ],
        out_shape=[
            jax.ShapeDtypeStruct((B, F_dim, T), jnp.float32),   # 'x'
            jax.ShapeDtypeStruct((B, K, T), jnp.float32),       # norm_att
            jax.ShapeDtypeStruct((B, K, T), jnp.float32),       # segmentwise
        ],
        scratch_shapes=[pltpu.VMEM((F_dim, T), jnp.float32)],   # mel-mean acc
        compiler_params=pltpu.CompilerParams(
            dimension_semantics=("parallel", "arbitrary"),
            vmem_limit_bytes=_vmem_limit_bytes()),
    )(xt, bn2, wenc, benc, w1, b1, wac, bac)

    # Lane-sparse (B, K) clipwise reduction done by XLA (kernel stays dense).
    clip = jnp.sum(natt * cla, axis=-1)
    return {"x": z, "clipwise_output": clip,
            "norm_att": natt, "segmentwise_output": cla}


# ------------------------- pure-JAX reference -------------------------
def ref_forward(x, params):
    gamma, beta, mean, var = (params["bn"][i] for i in range(4))
    scale = gamma / jnp.sqrt(var + BN_EPS)
    shift = beta - mean * scale
    xbn = x * scale[None, None, None, :] + shift[None, None, None, :]
    enc = jnp.maximum(
        jnp.einsum("fc,bctm->bftm", params["wenc"], xbn, precision=_HI)
        + params["benc"][None, :, 0, None, None], 0.0)
    h = jnp.mean(enc, axis=3)                                  # (B, F, T)
    pn = jnp.pad(h, ((0, 0), (0, 0), (1, 1)), constant_values=-jnp.inf)
    x1 = jnp.maximum(jnp.maximum(pn[..., :-2], pn[..., 1:-1]), pn[..., 2:])
    p0 = jnp.pad(h, ((0, 0), (0, 0), (1, 1)))
    x2 = (p0[..., :-2] + p0[..., 1:-1] + p0[..., 2:]) / 3.0
    hp = x1 + x2
    z = jnp.maximum(
        jnp.einsum("gf,bft->bgt", params["w1"], hp, precision=_HI)
        + params["b1"][None, :, 0, None], 0.0)
    att = jnp.tanh(jnp.einsum("kf,bft->bkt", params["wa"], z, precision=_HI)
                   + params["ba"][None, :, 0, None])
    natt = jax.nn.softmax(att, axis=-1)
    cla = jax.nn.sigmoid(jnp.einsum("kf,bft->bkt", params["wc"], z,
                                    precision=_HI)
                         + params["bc"][None, :, 0, None])
    clip = jnp.sum(natt * cla, axis=-1)
    return {"x": z, "clipwise_output": clip,
            "norm_att": natt, "segmentwise_output": cla}


def xavier_uniform(key, shape, fan_in, fan_out):
    limit = math.sqrt(6.0 / (fan_in + fan_out))
    return jax.random.uniform(key, shape, jnp.float32, -limit, limit)


if __name__ == "__main__":
    # Small shapes consistent with the module's forward: T lane-aligned
    # (multiple of 128), n_mels a multiple of the mel tile, default 24 classes.
    B, C_in, T, M = 2, 1, 256, 16        # (batch, in_channels, frames, n_mels)
    F_dim, K = 64, 24                    # num_features, num_classes

    key = jax.random.PRNGKey(0)
    k_x, k_enc, k_fc1, k_att, k_cla, k_bn = jax.random.split(key, 6)
    x = jax.random.normal(k_x, (B, C_in, T, M), jnp.float32)

    # Non-trivial BN running stats to exercise the folded-BN path.
    kg, kb, km, kv = jax.random.split(k_bn, 4)
    gamma = 1.0 + 0.1 * jax.random.normal(kg, (M,), jnp.float32)
    beta = 0.1 * jax.random.normal(kb, (M,), jnp.float32)
    rmean = 0.2 * jax.random.normal(km, (M,), jnp.float32)
    rvar = 1.0 + 0.2 * jax.random.uniform(kv, (M,), jnp.float32)

    params = {
        # bn0: [gamma, beta, running_mean, running_var] per mel bin
        "bn": jnp.stack([gamma, beta, rmean, rvar]).astype(jnp.float32),
        # stand-in encoder 1x1 conv
        "wenc": xavier_uniform(k_enc, (F_dim, C_in), C_in, F_dim),
        "benc": jnp.zeros((F_dim, 1), jnp.float32),
        # fc1
        "w1": xavier_uniform(k_fc1, (F_dim, F_dim), F_dim, F_dim),
        "b1": jnp.zeros((F_dim, 1), jnp.float32),
        # AttBlockV2 (Conv1d kernel_size=1 == per-timestep linear)
        "wa": xavier_uniform(k_att, (K, F_dim), F_dim, K),
        "ba": jnp.zeros((K, 1), jnp.float32),
        "wc": xavier_uniform(k_cla, (K, F_dim), F_dim, K),
        "bc": jnp.zeros((K, 1), jnp.float32),
    }

    out = timm_sed_forward(x, params)
    jax.block_until_ready(out)

    ref = ref_forward(x, params)
    # Tolerance: x and all weights are stored bf16 (per perf review) and the
    # MXU multiplies in bf16 with f32 accumulation; the EUP approximate
    # reciprocal is used for the softmax normalization.  The reference is f32
    # HIGHEST precision throughout.
    for name in ("x", "clipwise_output", "norm_att", "segmentwise_output"):
        np.testing.assert_allclose(np.asarray(out[name]), np.asarray(ref[name]),
                                   rtol=2e-2, atol=2e-2)

    print("KERNEL_OK")
</pallas_src>

<mosaic_0001>
module attributes {stable_mosaic.version = 11 : i64} {
  func.func @kernel(%arg0: i32, %arg1: i32, %arg2: memref<1x1x1x2048xbf16, #tpu.memory_space<vmem>>, %arg3: memref<2x2048xf32, #tpu.memory_space<vmem>>, %arg4: memref<64x8xbf16, #tpu.memory_space<vmem>>, %arg5: memref<64x1xf32, #tpu.memory_space<vmem>>, %arg6: memref<64x64xbf16, #tpu.memory_space<vmem>>, %arg7: memref<64x1xf32, #tpu.memory_space<vmem>>, %arg8: memref<48x64xbf16, #tpu.memory_space<vmem>>, %arg9: memref<48x1xf32, #tpu.memory_space<vmem>>, %arg10: memref<1x64x256xf32, #tpu.memory_space<vmem>>, %arg11: memref<1x24x256xf32, #tpu.memory_space<vmem>>, %arg12: memref<1x24x256xf32, #tpu.memory_space<vmem>>, %arg13: memref<64x256xf32, #tpu.memory_space<vmem>>) attributes {dimension_semantics = [#tpu.dimension_semantics<parallel>, #tpu.dimension_semantics<arbitrary>], iteration_bounds = array<i64: 2, 2>, scalar_prefetch = 0 : i64, scratch_operands = 1 : i64, tpu.core_type = #tpu.core_type<tc>, window_params = [{transform_indices = @transform_0, window_bounds = array<i64: 1, 1, 1, 2048>}, {transform_indices = @transform_1, window_bounds = array<i64: 2, 2048>}, {pipeline_mode = #tpu.pipeline_mode<synchronous>, transform_indices = @transform_2, window_bounds = array<i64: 64, 8>}, {pipeline_mode = #tpu.pipeline_mode<synchronous>, transform_indices = @transform_3, window_bounds = array<i64: 64, 1>}, {pipeline_mode = #tpu.pipeline_mode<synchronous>, transform_indices = @transform_4, window_bounds = array<i64: 64, 64>}, {pipeline_mode = #tpu.pipeline_mode<synchronous>, transform_indices = @transform_5, window_bounds = array<i64: 64, 1>}, {pipeline_mode = #tpu.pipeline_mode<synchronous>, transform_indices = @transform_6, window_bounds = array<i64: 48, 64>}, {pipeline_mode = #tpu.pipeline_mode<synchronous>, transform_indices = @transform_7, window_bounds = array<i64: 48, 1>}, {transform_indices = @transform_8, window_bounds = array<i64: 1, 64, 256>}, {transform_indices = @transform_9, window_bounds = array<i64: 1, 24, 256>}, {transform_indices = @transform_10, window_bounds = array<i64: 1, 24, 256>}]} {
    %c0 = arith.constant 0 : index
    %c0_0 = arith.constant 0 : index
    %c0_1 = arith.constant 0 : index
    %c0_2 = arith.constant 0 : index
    %0 = vector.load %arg2[%c0, %c0_0, %c0_1, %c0_2] : memref<1x1x1x2048xbf16, #tpu.memory_space<vmem>>, vector<1x1x1x2048xbf16>
    %1 = vector.shape_cast %0 : vector<1x1x1x2048xbf16> to vector<1x2048xbf16>
    %2 = arith.extf %1 : vector<1x2048xbf16> to vector<1x2048xf32>
    %c0_3 = arith.constant 0 : index
    %c0_4 = arith.constant 0 : index
    %3 = vector.load %arg3[%c0_3, %c0_4] : memref<2x2048xf32, #tpu.memory_space<vmem>>, vector<1x2048xf32>
    %4 = arith.mulf %2, %3 : vector<1x2048xf32>
    %c1 = arith.constant 1 : index
    %c0_5 = arith.constant 0 : index
    %5 = vector.load %arg3[%c1, %c0_5] : memref<2x2048xf32, #tpu.memory_space<vmem>>, vector<1x2048xf32>
    %6 = arith.addf %4, %5 : vector<1x2048xf32>
    %cst = arith.constant 0.000000e+00 : f32
    %7 = vector.broadcast %cst : f32 to vector<7x2048xf32>
    %8 = tpu.concatenate %6, %7 in 0 : vector<1x2048xf32>, vector<7x2048xf32> -> vector<8x2048xf32>
    %9 = arith.truncf %8 : vector<8x2048xf32> to vector<8x2048xbf16>
    %c0_6 = arith.constant 0 : index
    %c0_7 = arith.constant 0 : index
    %10 = vector.load %arg4[%c0_6, %c0_7] : memref<64x8xbf16, #tpu.memory_space<vmem>>, vector<64x8xbf16>
    %cst_8 = arith.constant dense<0.000000e+00> : vector<64x2048xf32>
    %11 = tpu.matmul %10, %9, %cst_8 {dimension_numbers = #tpu.dot_dimension_numbers<[1], [0], [0], [1], [0, 0, 1, 1], [], []>} : vector<64x8xbf16>, vector<8x2048xbf16>, vector<64x2048xf32> -> vector<64x2048xf32>
    %c0_9 = arith.constant 0 : index
    %c0_10 = arith.constant 0 : index
    %12 = vector.load %arg5[%c0_9, %c0_10] : memref<64x1xf32, #tpu.memory_space<vmem>>, vector<64x1xf32>
    %13 = vector.broadcast %12 : vector<64x1xf32> to vector<64x2048xf32>
    %14 = arith.addf %11, %13 : vector<64x2048xf32>
    %cst_11 = arith.constant 0.000000e+00 : f32
    %15 = vector.broadcast %cst_11 : f32 to vector<64x2048xf32>
    %16 = arith.maximumf %14, %15 : vector<64x2048xf32>
    %17 = vector.extract_strided_slice %16 {offsets = [0, 0], sizes = [64, 256], strides = [1, 1]} : vector<64x2048xf32> to vector<64x256xf32>
    %18 = vector.extract_strided_slice %16 {offsets = [0, 256], sizes = [64, 256], strides = [1, 1]} : vector<64x2048xf32> to vector<64x256xf32>
    %19 = arith.addf %17, %18 : vector<64x256xf32>
    %20 = vector.extract_strided_slice %16 {offsets = [0, 512], sizes = [64, 256], strides = [1, 1]} : vector<64x2048xf32> to vector<64x256xf32>
    %21 = arith.addf %19, %20 : vector<64x256xf32>
    %22 = vector.extract_strided_slice %16 {offsets = [0, 768], sizes = [64, 256], strides = [1, 1]} : vector<64x2048xf32> to vector<64x256xf32>
    %23 = arith.addf %21, %22 : vector<64x256xf32>
    %24 = vector.extract_strided_slice %16 {offsets = [0, 1024], sizes = [64, 256], strides = [1, 1]} : vector<64x2048xf32> to vector<64x256xf32>
    %25 = arith.addf %23, %24 : vector<64x256xf32>
    %26 = vector.extract_strided_slice %16 {offsets = [0, 1280], sizes = [64, 256], strides = [1, 1]} : vector<64x2048xf32> to vector<64x256xf32>
    %27 = arith.addf %25, %26 : vector<64x256xf32>
    %28 = vector.extract_strided_slice %16 {offsets = [0, 1536], sizes = [64, 256], strides = [1, 1]} : vector<64x2048xf32> to vector<64x256xf32>
    %29 = arith.addf %27, %28 : vector<64x256xf32>
    %30 = vector.extract_strided_slice %16 {offsets = [0, 1792], sizes = [64, 256], strides = [1, 1]} : vector<64x2048xf32> to vector<64x256xf32>
    %31 = arith.addf %29, %30 : vector<64x256xf32>
    %c0_i32 = arith.constant 0 : i32
    %32 = arith.cmpi eq, %arg1, %c0_i32 : i32
    %33 = arith.extui %32 : i1 to i32
    %c0_i32_12 = arith.constant 0 : i32
    %34 = arith.cmpi ne, %33, %c0_i32_12 : i32
    scf.if %34 {
      %c0_16 = arith.constant 0 : index
      %c0_17 = arith.constant 0 : index
      %41 = vector.load %arg13[%c0_16, %c0_17] : memref<64x256xf32, #tpu.memory_space<vmem>>, vector<64x256xf32>
      tpu.vector_store %arg13[%c0_16, %c0_17], %31 {strides = array<i32>} : memref<64x256xf32, #tpu.memory_space<vmem>>, vector<64x256xf32>,
    } else {
    }
    %c0_i32_13 = arith.constant 0 : i32
    %35 = arith.cmpi sgt, %arg1, %c0_i32_13 : i32
    %36 = arith.extui %35 : i1 to i32
    %c0_i32_14 = arith.constant 0 : i32
    %37 = arith.cmpi ne, %36, %c0_i32_14 : i32
    scf.if %37 {
      %c0_16 = arith.constant 0 : index
      %c0_17 = arith.constant 0 : index
      %41 = vector.load %arg13[%c0_16, %c0_17] : memref<64x256xf32, #tpu.memory_space<vmem>>, vector<64x256xf32>
      %42 = arith.addf %41, %31 : vector<64x256xf32>
      %c0_18 = arith.constant 0 : index
      %c0_19 = arith.constant 0 : index
      %43 = vector.load %arg13[%c0_18, %c0_19] : memref<64x256xf32, #tpu.memory_space<vmem>>, vector<64x256xf32>
      tpu.vector_store %arg13[%c0_18, %c0_19], %42 {strides = array<i32>} : memref<64x256xf32, #tpu.memory_space<vmem>>, vector<64x256xf32>,
    } else {
    }
    %c1_i32 = arith.constant 1 : i32
    %38 = arith.cmpi eq, %arg1, %c1_i32 : i32
    %39 = arith.extui %38 : i1 to i32
    %c0_i32_15 = arith.constant 0 : i32
    %40 = arith.cmpi ne, %39, %c0_i32_15 : i32
    scf.if %40 {
      %c0_16 = arith.constant 0 : index
      %c0_17 = arith.constant 0 : index
      %41 = vector.load %arg13[%c0_16, %c0_17] : memref<64x256xf32, #tpu.memory_space<vmem>>, vector<64x256xf32>
      %cst_18 = arith.constant 6.250000e-02 : f32
      %42 = vector.broadcast %cst_18 : f32 to vector<64x256xf32>
      %43 = arith.mulf %41, %42 : vector<64x256xf32>
      %44 = tpu.iota {dimensions = array<i32: 1>} : vector<1x256xi32>
      %45 = arith.sitofp %44 : vector<1x256xi32> to vector<1x256xf32>
      %c1_i32_19 = arith.constant 1 : i32
      %46 = tpu.dynamic_rotate %43 by %c1_i32_19 dim 1 : vector<64x256xf32>, i32 -> vector<64x256xf32>
      %c1_i32_20 = arith.constant 1 : i32
      %47 = tpu.dynamic_rotate %45 by %c1_i32_20 dim 1 : vector<1x256xf32>, i32 -> vector<1x256xf32>
      %c255_i32 = arith.constant 255 : i32
      %48 = tpu.dynamic_rotate %43 by %c255_i32 dim 1 : vector<64x256xf32>, i32 -> vector<64x256xf32>
      %c255_i32_21 = arith.constant 255 : i32
      %49 = tpu.dynamic_rotate %45 by %c255_i32_21 dim 1 : vector<1x256xf32>, i32 -> vector<1x256xf32>
      %50 = arith.subf %47, %45 : vector<1x256xf32>
      %51 = arith.subf %49, %45 : vector<1x256xf32>
      %cst_22 = arith.constant 1.000000e+00 : f32
      %52 = vector.broadcast %cst_22 : f32 to vector<1x256xf32>
      %53 = arith.cmpf oeq, %50, %52 : vector<1x256xf32>
      %cst_23 = arith.constant -1.000000e+00 : f32
      %54 = vector.broadcast %cst_23 : f32 to vector<1x256xf32>
      %55 = arith.cmpf oeq, %50, %54 : vector<1x256xf32>
      %56 = arith.ori %53, %55 : vector<1x256xi1>
      %cst_24 = arith.constant 1.000000e+00 : f32
      %57 = vector.broadcast %cst_24 : f32 to vector<1x256xf32>
      %58 = arith.cmpf oeq, %51, %57 : vector<1x256xf32>
      %cst_25 = arith.constant -1.000000e+00 : f32
      %59 = vector.broadcast %cst_25 : f32 to vector<1x256xf32>
      %60 = arith.cmpf oeq, %51, %59 : vector<1x256xf32>
      %61 = arith.ori %58, %60 : vector<1x256xi1>
      %cst_26 = arith.constant 0xFF800000 : f32
      %62 = vector.shape_cast %56 : vector<1x256xi1> to vector<1x256xi1>
      %63 = vector.broadcast %62 : vector<1x256xi1> to vector<64x256xi1>
      %64 = vector.broadcast %cst_26 : f32 to vector<64x256xf32>
      %65 = arith.select %63, %46, %64 : vector<64x256xi1>, vector<64x256xf32>
      %cst_27 = arith.constant 0xFF800000 : f32
      %66 = vector.shape_cast %61 : vector<1x256xi1> to vector<1x256xi1>
      %67 = vector.broadcast %66 : vector<1x256xi1> to vector<64x256xi1>
      %68 = vector.broadcast %cst_27 : f32 to vector<64x256xf32>
      %69 = arith.select %67, %48, %68 : vector<64x256xi1>, vector<64x256xf32>
      %70 = arith.maximumf %65, %69 : vector<64x256xf32>
      %71 = arith.maximumf %70, %43 : vector<64x256xf32>
      %cst_28 = arith.constant 0.000000e+00 : f32
      %72 = vector.shape_cast %56 : vector<1x256xi1> to vector<1x256xi1>
      %73 = vector.broadcast %72 : vector<1x256xi1> to vector<64x256xi1>
      %74 = vector.broadcast %cst_28 : f32 to vector<64x256xf32>
      %75 = arith.select %73, %46, %74 : vector<64x256xi1>, vector<64x256xf32>
      %76 = arith.addf %43, %75 : vector<64x256xf32>
      %cst_29 = arith.constant 0.000000e+00 : f32
      %77 = vector.shape_cast %61 : vector<1x256xi1> to vector<1x256xi1>
      %78 = vector.broadcast %77 : vector<1x256xi1> to vector<64x256xi1>
      %79 = vector.broadcast %cst_29 : f32 to vector<64x256xf32>
      %80 = arith.select %78, %48, %79 : vector<64x256xi1>, vector<64x256xf32>
      %81 = arith.addf %76, %80 : vector<64x256xf32>
      %cst_30 = arith.constant 0.333333343 : f32
      %82 = vector.broadcast %cst_30 : f32 to vector<64x256xf32>
      %83 = arith.mulf %81, %82 : vector<64x256xf32>
      %84 = arith.addf %71, %83 : vector<64x256xf32>
      %85 = arith.truncf %84 : vector<64x256xf32> to vector<64x256xbf16>
      %c0_31 = arith.constant 0 : index
      %c0_32 = arith.constant 0 : index
      %86 = vector.load %arg6[%c0_31, %c0_32] : memref<64x64xbf16, #tpu.memory_space<vmem>>, vector<64x64xbf16>
      %cst_33 = arith.constant dense<0.000000e+00> : vector<64x256xf32>
      %87 = tpu.matmul %86, %85, %cst_33 {dimension_numbers = #tpu.dot_dimension_numbers<[1], [0], [0], [1], [0, 0, 1, 1], [], []>} : vector<64x64xbf16>, vector<64x256xbf16>, vector<64x256xf32> -> vector<64x256xf32>
      %c0_34 = arith.constant 0 : index
      %c0_35 = arith.constant 0 : index
      %88 = vector.load %arg7[%c0_34, %c0_35] : memref<64x1xf32, #tpu.memory_space<vmem>>, vector<64x1xf32>
      %89 = vector.broadcast %88 : vector<64x1xf32> to vector<64x256xf32>
      %90 = arith.addf %87, %89 : vector<64x256xf32>
      %cst_36 = arith.constant 0.000000e+00 : f32
      %91 = vector.broadcast %cst_36 : f32 to vector<64x256xf32>
      %92 = arith.maximumf %90, %91 : vector<64x256xf32>
      %c0_37 = arith.constant 0 : index
      %c0_38 = arith.constant 0 : index
      %c0_39 = arith.constant 0 : index
      %93 = vector.load %arg10[%c0_37, %c0_38, %c0_39] : memref<1x64x256xf32, #tpu.memory_space<vmem>>, vector<1x64x256xf32>
      %94 = vector.shape_cast %93 : vector<1x64x256xf32> to vector<64x256xf32>
      %95 = vector.shape_cast %92 : vector<64x256xf32> to vector<1x64x256xf32>
      tpu.vector_store %arg10[%c0_37, %c0_38, %c0_39], %95 {strides = array<i32>} : memref<1x64x256xf32, #tpu.memory_space<vmem>>, vector<1x64x256xf32>,
      %c0_40 = arith.constant 0 : index
      %c0_41 = arith.constant 0 : index
      %96 = vector.load %arg8[%c0_40, %c0_41] : memref<48x64xbf16, #tpu.memory_space<vmem>>, vector<48x64xbf16>
      %97 = arith.truncf %92 : vector<64x256xf32> to vector<64x256xbf16>
      %cst_42 = arith.constant dense<0.000000e+00> : vector<48x256xf32>
      %98 = tpu.matmul %96, %97, %cst_42 {dimension_numbers = #tpu.dot_dimension_numbers<[1], [0], [0], [1], [0, 0, 1, 1], [], []>} : vector<48x64xbf16>, vector<64x256xbf16>, vector<48x256xf32> -> vector<48x256xf32>
      %c0_43 = arith.constant 0 : index
      %c0_44 = arith.constant 0 : index
      %99 = vector.load %arg9[%c0_43, %c0_44] : memref<48x1xf32, #tpu.memory_space<vmem>>, vector<48x1xf32>
      %100 = vector.broadcast %99 : vector<48x1xf32> to vector<48x256xf32>
      %101 = arith.addf %98, %100 : vector<48x256xf32>
      %102 = vector.extract_strided_slice %101 {offsets = [0, 0], sizes = [24, 256], strides = [1, 1]} : vector<48x256xf32> to vector<24x256xf32>
      %103 = math.tanh %102 : vector<24x256xf32>
      %104 = vector.extract_strided_slice %101 {offsets = [24, 0], sizes = [24, 256], strides = [1, 1]} : vector<48x256xf32> to vector<24x256xf32>
      %105 = arith.negf %104 : vector<24x256xf32>
      %106 = math.exp %105 : vector<24x256xf32>
      %cst_45 = arith.constant 1.000000e+00 : f32
      %107 = vector.broadcast %cst_45 : f32 to vector<24x256xf32>
      %108 = arith.addf %107, %106 : vector<24x256xf32>
      %109 = arith.divf %107, %108 : vector<24x256xf32>
      %110 = math.exp %103 : vector<24x256xf32>
      %cst_46 = arith.constant dense<0.000000e+00> : vector<24xf32>
      %111 = vector.multi_reduction <add>, %110, %cst_46 [1] : vector<24x256xf32> to vector<24xf32>
      %112 = vector.shape_cast %111 : vector<24xf32> to vector<24x1xf32>
      %113 = tpu.reciprocal %112 {approx = true} : vector<24x1xf32> -> vector<24x1xf32>
      %114 = vector.broadcast %113 : vector<24x1xf32> to vector<24x256xf32>
      %115 = arith.mulf %110, %114 : vector<24x256xf32>
      %c0_47 = arith.constant 0 : index
      %c0_48 = arith.constant 0 : index
      %c0_49 = arith.constant 0 : index
      %116 = vector.load %arg11[%c0_47, %c0_48, %c0_49] : memref<1x24x256xf32, #tpu.memory_space<vmem>>, vector<1x24x256xf32>
      %117 = vector.shape_cast %116 : vector<1x24x256xf32> to vector<24x256xf32>
      %118 = vector.shape_cast %115 : vector<24x256xf32> to vector<1x24x256xf32>
      tpu.vector_store %arg11[%c0_47, %c0_48, %c0_49], %118 {strides = array<i32>} : memref<1x24x256xf32, #tpu.memory_space<vmem>>, vector<1x24x256xf32>,
      %c0_50 = arith.constant 0 : index
      %c0_51 = arith.constant 0 : index
      %c0_52 = arith.constant 0 : index
      %119 = vector.load %arg12[%c0_50, %c0_51, %c0_52] : memref<1x24x256xf32, #tpu.memory_space<vmem>>, vector<1x24x256xf32>
      %120 = vector.shape_cast %119 : vector<1x24x256xf32> to vector<24x256xf32>
      %121 = vector.shape_cast %109 : vector<24x256xf32> to vector<1x24x256xf32>
      tpu.vector_store %arg12[%c0_50, %c0_51, %c0_52], %121 {strides = array<i32>} : memref<1x24x256xf32, #tpu.memory_space<vmem>>, vector<1x24x256xf32>,
    } else {
    }
    return
  }
  func.func @transform_0(%arg0: i32, %arg1: i32) -> (i32, i32, i32, i32) {
    %c0_i32 = arith.constant 0 : i32
    %c0_i32_0 = arith.constant 0 : i32
    %c0_i32_1 = arith.constant 0 : i32
    return %arg0, %arg1, %c0_i32, %c0_i32_0 : i32, i32, i32, i32
  }
  func.func @transform_1(%arg0: i32, %arg1: i32) -> (i32, i32) {
    %c0_i32 = arith.constant 0 : i32
    %c0_i32_0 = arith.constant 0 : i32
    return %c0_i32, %arg1 : i32, i32
  }
  func.func @transform_2(%arg0: i32, %arg1: i32) -> (i32, i32) {
    %c0_i32 = arith.constant 0 : i32
    %c0_i32_0 = arith.constant 0 : i32
    %c0_i32_1 = arith.constant 0 : i32
    return %c0_i32, %c0_i32_0 : i32, i32
  }
  func.func @transform_3(%arg0: i32, %arg1: i32) -> (i32, i32) {
    %c0_i32 = arith.constant 0 : i32
    %c0_i32_0 = arith.constant 0 : i32
    %c0_i32_1 = arith.constant 0 : i32
    return %c0_i32, %c0_i32_0 : i32, i32
  }
  func.func @transform_4(%arg0: i32, %arg1: i32) -> (i32, i32) {
    %c0_i32 = arith.constant 0 : i32
    %c0_i32_0 = arith.constant 0 : i32
    %c0_i32_1 = arith.constant 0 : i32
    return %c0_i32, %c0_i32_0 : i32, i32
  }
  func.func @transform_5(%arg0: i32, %arg1: i32) -> (i32, i32) {
    %c0_i32 = arith.constant 0 : i32
    %c0_i32_0 = arith.constant 0 : i32
    %c0_i32_1 = arith.constant 0 : i32
    return %c0_i32, %c0_i32_0 : i32, i32
  }
  func.func @transform_6(%arg0: i32, %arg1: i32) -> (i32, i32) {
    %c0_i32 = arith.constant 0 : i32
    %c0_i32_0 = arith.constant 0 : i32
    %c0_i32_1 = arith.constant 0 : i32
    return %c0_i32, %c0_i32_0 : i32, i32
  }
  func.func @transform_7(%arg0: i32, %arg1: i32) -> (i32, i32) {
    %c0_i32 = arith.constant 0 : i32
    %c0_i32_0 = arith.constant 0 : i32
    %c0_i32_1 = arith.constant 0 : i32
    return %c0_i32, %c0_i32_0 : i32, i32
  }
  func.func @transform_8(%arg0: i32, %arg1: i32) -> (i32, i32, i32) {
    %c0_i32 = arith.constant 0 : i32
    %c0_i32_0 = arith.constant 0 : i32
    %c0_i32_1 = arith.constant 0 : i32
    return %arg0, %c0_i32, %c0_i32_0 : i32, i32, i32
  }
  func.func @transform_9(%arg0: i32, %arg1: i32) -> (i32, i32, i32) {
    %c0_i32 = arith.constant 0 : i32
    %c0_i32_0 = arith.constant 0 : i32
    %c0_i32_1 = arith.constant 0 : i32
    return %arg0, %c0_i32, %c0_i32_0 : i32, i32, i32
  }
  func.func @transform_10(%arg0: i32, %arg1: i32) -> (i32, i32, i32) {
    %c0_i32 = arith.constant 0 : i32
    %c0_i32_0 = arith.constant 0 : i32
    %c0_i32_1 = arith.constant 0 : i32
    return %arg0, %c0_i32, %c0_i32_0 : i32, i32, i32
  }
}

</mosaic_0001>

<bundles_post_ra>
// kernel: tpu_custom_call.1
= control target key start
LH: loop header
LB: loop body
LE: loop exit
PB: predicated region body
PF: predicated region fallthrough
CT: control target
= control target key end

     0   :  { %s4366_s0 = inlined_call_operand.vmem [shape: bf16[2,2,1,2048], index: 0, kind: input, shape index: {}]   ;;  %s4367_s1 = inlined_call_operand.vmem [shape: f32[2,4096], index: 1, kind: input, shape index: {}]   ;;  %s4368_s2 = inlined_call_operand.vmem [shape: bf16[64,8], index: 2, kind: input, shape index: {}]   ;;  %s4369_s3 = inlined_call_operand.vmem [shape: f32[64,1], index: 3, kind: input, shape index: {}]   ;;  %s4370_s4 = inlined_call_operand.vmem [shape: bf16[64,64], index: 4, kind: input, shape index: {}]   ;;  %s4371_s5 = inlined_call_operand.vmem [shape: f32[64,1], index: 5, kind: input, shape index: {}]   ;;  %s4372_s6 = inlined_call_operand.vmem [shape: bf16[48,64], index: 6, kind: input, shape index: {}]   ;;  %s4373_s7 = inlined_call_operand.vmem [shape: f32[48,1], index: 7, kind: input, shape index: {}]   ;;  %s4374_s8 = inlined_call_operand.hbm [shape: f32[2,64,256], index: 8, kind: output, shape index: {0}]   ;;  %s4375_s9 = inlined_call_operand.hbm [shape: f32[2,24,256], index: 9, kind: output, shape index: {1}]   ;;  %s4376_s10 = inlined_call_operand.hbm [shape: f32[2,24,256], index: 10, kind: output, shape index: {2}]  }
   0x1   :  { %4382 = sst [smem:[#allocation15_spill]] %s4366_s0 }
   0x2   :  { %4383 = sst [smem:[#allocation16_spill]] %s4367_s1 }
   0x3   :  { %4384 = sst [smem:[#allocation17_spill]] %s4368_s2 }
   0x4   :  { %4385 = sst [smem:[#allocation18_spill]] %s4369_s3 }
   0x5   :  { %4386 = sst [smem:[#allocation19_spill]] %s4370_s4 }
   0x6   :  { %4387 = sst [smem:[#allocation20_spill]] %s4371_s5 }
   0x7   :  { %4388 = sst [smem:[#allocation21_spill]] %s4372_s6 }
   0x8   :  { %16 = vsyncpa [#allocation4], 0 }
   0x9   :  { %18 = vsyncpa [#allocation4 + $0x1], 0 }
   0xa   :  { %19 = vsyncpa [#allocation6], 0 }
   0xb   :  { %21 = vsyncpa [#allocation6 + $0x1], 0  ;;  %s3028_s13 = smov 0   ;;  %s3030_s14 = smov 0  }
   0xc   :  { %s3032_s15 = smov 0   ;;  %s3034_s16 = smov 0  }
   0xd   :  { %s3036_s17 = smov 0   ;;  %s3038_s18 = smov 0  }
   0xe   :  { %s3040_s19 = smov 0   ;;  %s3042_s20 = smov 0  }
   0xf LB: > { %4389 = sst [smem:[#allocation10_spill]] %s2955_s18  ;;  %s4378_s21 = sadd.s32 4294967295, %s2963_s20   ;;  %s2963_s20 = sphi %s3042_s20, %s27_s20   ;;  %s2959_s19 = sphi %s3040_s19, %s4420_s19   ;;  %s2955_s18 = sphi %s3038_s18, %s4419_s18   ;;  %s2951_s17 = sphi %s3036_s17, %s4418_s17   ;;  %s2947_s16 = sphi %s3034_s16, %s4417_s16   ;;  %s2943_s15 = sphi %s3032_s15, %s4423_s15   ;;  %s2939_s14 = sphi %s3030_s14, %s4422_s14   ;;  %s2935_s13 = sphi %s3028_s13, %s4421_s13  }
  0x10   : > { %4390 = sst [smem:[#allocation11_spill]] %s2959_s19  ;;  %s4377_s22 = sadd.s32 4294967294, %s2963_s20  }
  0x11   : > { %s36_s23 = sadd.s32 1, %s2955_s18  ;;  %s39_s24 = sadd.s32 1, %s2959_s19 }
  0x12   : > { %p37_p0 = scmp.ge.s32.totalorder %s36_s23, 2  ;;  %p236_p1 = scmp.ne.s32.totalorder %s2943_s15, %s2939_s14 }
  0x13   : > { %p237_p2 = scmp.eq.s32.totalorder %s4378_s21, 3  ;;  %p242_p4 = scmp.ne.s32.totalorder %s2939_s14, %s2935_s13 }
  0x14   : > { %s4425_s23 = smov (%p37_p0, %s36_s23), 0  ;;  %s4427_s24 = smov (!%p37_p0, %s39_s24), %s2959_s19 }
  0x15   : > { %4391 = sst [smem:[#allocation12_spill]] %s4425_s23  ;;  %p3079_p3 = por %p237_p2, %p236_p1 }
  0x16   : > { %p41_p5 = scmp.ge.s32.totalorder %s4427_s24, 2  ;;  %p243_p6 = scmp.eq.s32.totalorder %s4377_s22, 3 }
  0x17   : > { %p2498_p7 = scmp.ge.s32.totalorder %s2963_s20, 1  ;;  %p351_p8 = scmp.lt.s32.totalorder %s2963_s20, 5 }
  0x18   : > { %s4429_s24 = smov (%p41_p5, %s4427_s24), 0  ;;  %p3091_p9 = por %p243_p6, %p242_p4 }
  0x19   : > { %4393 = sst [smem:[#allocation13_spill]] %s4429_s24  ;;  %p352_p10 = pnand %p2498_p7, %p351_p8 }
  0x1a   : > { %s223_s27 = ssub.s32 %s2959_s19, %s4429_s24  ;;  %s226_s28 = sadd.s32 1, %s2943_s15 }
  0x1b   : > { %p224_p11 = scmp.eq.s32.totalorder %s223_s27, 0  ;;  %355 = sbr.rel (%p352_p10) target bundleno = 1264 (0x4f0), region = 52 }
  0x1c   : > { %s3102_s30 = sand.u32 (!%p352_p10), 1, %s2939_s14   ;;  %p407_p12 = scmp.lt.s32.totalorder (!%p352_p10), %s2951_s17, 1 }
  0x1d   : > { %s3099_s29 = scalar_select %p224_p11, %s2943_s15, %s226_s28  }
  0x1e   : > { %p409_p13 = scmp.lt.s32.totalorder (!%p352_p10), %s2947_s16, 1  ;;  %s4396_s3 = sld [smem:[#allocation18_spill]] (!%p352_p10) }
  0x1f   : > { %4395 = sst [smem:[#allocation14_spill]] %s3099_s29  ;;  %s2502_s23 = sshll.u32 (!%p352_p10), %s2947_s16, 4 }
  0x20   : > { %v2965_v1 = vmov 0   ;;  %s408_s27 = scalar_select %p407_p12, %s2951_s17, 1  ;;  %v2966_v2 = vmov 857870592   ;;  %v2967_v4 = vmov 2003195204  }
  0x21   : > { %2749 = vset.pattern.permute.xlu0 %v2965_v1  ;;  %2750 = vset.pattern.permute.xlu1 %v2965_v1  ;;  %s410_s28 = scalar_select %p409_p13, %s2947_s16, 1  ;;  %v434_v3 = vunpack.c.l.s4 %v2966_v2  ;;  %v438_v5 = vunpack.c.l.s4 %v2967_v4  ;;  %vm523_vm0 = vcmask 1040384   ;;  %vm645_vm1 = vcmask 1043456  }
  0x22   : > { %2751 = vset.pattern.permute.xlu2 %v2965_v1  ;;  %s2501_s24 = sshll.u32 %s408_s27, 5  ;;  %p416_p0 = scmp.lt.s32.totalorder %s2502_s23, 31  ;;  %vm632_vm2 = vcmask 64512  }
  0x23   : > { %s2500_s19 = sshll.u32 %s410_s28, 4  ;;  %s4397_s0 = sld [smem:[#allocation15_spill]]  ;;  %v3120_v7 = vunpack.c.0.s8 %v434_v3  ;;  %v3122_v8 = vunpack.c.0.s8 %v438_v5 }
  0x24   : > { %v564_v0 = vld [vmem:[%s4396_s3] sm:$0xff]  ;;  %s413_s12 = sadd.s32 %s2501_s24, %s2500_s19  ;;  %s4431_s23 = smov (!%p416_p0, %s2502_s23), 31  ;;  %v565_v17 = vld [vmem:[%s4396_s3 + $0x8] sm:$0xff]  ;;  %v566_v18 = vld [vmem:[%s4396_s3 + $0x10] sm:$0xff] }
  0x25   : > { %574 = vperm.xlu0 %2749, %v564_v0   ;;  %s2503_s22 = sshll.u32 %s4431_s23, 1  ;;  %s4398_s1 = sld [smem:[#allocation16_spill]]  ;;  %584 = vperm.xlu1 %2750, %v566_v18   ;;  %v567_v56 = vld [vmem:[%s4396_s3 + $0x18] sm:$0xff]  ;;  %v570_v58 = vld [vmem:[%s4396_s3 + $0x30] sm:$0xff]  ;;  %v568_v0 = vld [vmem:[%s4396_s3 + $0x20] sm:$0xff] }
  0x26   : > { %s4399_s2 = sld [smem:[#allocation17_spill]]  ;;  %594 = vperm.xlu2 %2751, %v568_v0   ;;  %v571_v3 = vld [vmem:[%s4396_s3 + $0x38] sm:$0xff]  ;;  %s4400_s23 = sshll.u32 %s3102_s30, 7 }
  0x27   : > { %s3671_s24 = scalar_lea.vmem [#allocation3], %s4400_s23  ;;  %s4401_s11 = smul.u32 48, %s3102_s30 }
  0x28   : > { %p2587_p1 = scmp.ne.s32.totalorder %s2947_s16, 0 }
  0x29   : > { %s3117_s21 = scalar_lea.vmem %s4397_s0, %s413_s12  ;;  %s3675_s12 = scalar_lea.vmem [#allocation5], %s4401_s11 }
  0x2a   : > { %v422_v6 = vld [vmem:[%s3117_s21] sm:$0xff]  ;;  %v423_v60 = vld [vmem:[%s3117_s21 + $0x8] sm:$0xff] }
  0x2b   : > { %s3127_s29 = scalar_lea.vmem %s4398_s1, %s2503_s22  ;;  %v424_v9 = vunpack.c.l.bf16 %v422_v6  ;;  %v425_v10 = vunpack.c.h.bf16 %v422_v6  ;;  %v426_v61 = vunpack.c.l.bf16 %v423_v60  ;;  %v569_v6 = vld [vmem:[%s4396_s3 + $0x28] sm:$0xff]  ;;  %s4402_s22 = smov %s4401_s11 }
  0x2c   : > { %v428_v11 = vld [vmem:[%s3127_s29] ss:$2 sm:$0xff]  ;;  %v2505_v12 = vld [vmem:[%s3127_s29 + $0x1] ss:$2 sm:$0xff]  ;;  %v3192_v59 = vld [vmem:[%s4399_s2 + $0x10] sm:$0xff]  ;;  %s3679_s21 = scalar_lea.vmem [#allocation7], %s4402_s22 }
  0x2d   : > { %v436_v13 = vperm.slane %v428_v11, %v3120_v7  ;;  %v466_v14 = vperm.slane %v2505_v12, %v3120_v7  ;;  %v440_v15 = vperm.slane %v428_v11, %v3122_v8  ;;  %v470_v16 = vperm.slane %v2505_v12, %v3122_v8  ;;  %579 = vperm.xlu0 %2749, %v565_v17   ;;  %v3156_v47 = vld [vmem:[%s4399_s2] sm:$0xff]  ;;  %v3176_v57 = vld [vmem:[%s4399_s2 + $0x8] sm:$0xff]  ;;  %v2504_v62 = vld [vmem:[%s3127_s29 + $0x10] ss:$2 sm:$0xff] }
  0x2e   : > { %589 = vperm.xlu1 %2750, %v567_v56   ;;  %v2506_v63 = vld [vmem:[%s3127_s29 + $0x11] ss:$2 sm:$0xff]  ;;  %v444_v1 = vperm.slane %v2504_v62, %v3120_v7  ;;  %599 = vperm.xlu2 %2751, %v569_v6  }
  0x2f   : > { %v453_v19 = vmul.f32 %v436_v13, %v424_v9  ;;  %v454_v20 = vmul.f32 %v440_v15, %v425_v10  ;;  %v474_v2 = vperm.slane %v2506_v63, %v3120_v7 }
  0x30   : > { %v455_v4 = vmul.f32 %v444_v1, %v426_v61 }
  0x31   : > { %v483_v21 = vadd.f32 %v466_v14, %v453_v19  ;;  %v484_v22 = vadd.f32 %v470_v16, %v454_v20  ;;  %v3223_v20 = vld [vmem:[%s4399_s2 + $0x18] sm:$0xff] }
  0x32   : > { %v485_v5 = vadd.f32 %v474_v2, %v455_v4 }
  0x33   : > { %v491_v23 = vperm.slane %v483_v21, 0  ;;  %v492_v24 = vperm.slane %v483_v21, 2  ;;  %v493_v25 = vperm.slane %v483_v21, 4  ;;  %v494_v26 = vperm.slane %v483_v21, 6 }
  0x34   : > { %v497_v27 = vperm.slane %v484_v22, 4  ;;  %v498_v28 = vperm.slane %v484_v22, 6  ;;  %v495_v29 = vperm.slane %v484_v22, 0  ;;  %v496_v30 = vperm.slane %v484_v22, 2 }
  0x35   : > { %v524_v31 = vsel %vm523_vm0, %v491_v23, 0.0  ;;  %v525_v32 = vsel %vm523_vm0, %v492_v24, 0.0  ;;  %v526_v33 = vsel %vm523_vm0, %v493_v25, 0.0  ;;  %v527_v34 = vsel %vm523_vm0, %v494_v26, 0.0  ;;  %604 = vperm.xlu0 %2749, %v570_v58  }
  0x36   : > { %v540_v35 = vpack.c.bf16 %v524_v31, %v524_v31  ;;  %v541_v36 = vpack.c.bf16 %v525_v32, %v525_v32  ;;  %v542_v37 = vpack.c.bf16 %v526_v33, %v526_v33  ;;  %v543_v38 = vpack.c.bf16 %v527_v34, %v527_v34  ;;  %609 = vperm.xlu1 %2750, %v571_v3  }
  0x37   : > { %v530_v39 = vsel %vm523_vm0, %v497_v27, 0.0  ;;  %v531_v40 = vsel %vm523_vm0, %v498_v28, 0.0  ;;  %v528_v41 = vsel %vm523_vm0, %v495_v29, 0.0  ;;  %v529_v42 = vsel %vm523_vm0, %v496_v30, 0.0 }
  0x38   : > { %v647_v43 = vsel %vm645_vm1, %v540_v35, 0  ;;  %v650_v44 = vsel %vm645_vm1, %v541_v36, 0  ;;  %v653_v45 = vsel %vm645_vm1, %v542_v37, 0  ;;  %v656_v46 = vsel %vm645_vm1, %v543_v38, 0 }
  0x39   : > { %701 = vmatpush.bf16.msra.mxu0 %v647_v43  ;;  %730 = vmatpush.bf16.msra.mxu1 %v650_v44  ;;  %v546_v48 = vpack.c.bf16 %v530_v39, %v530_v39  ;;  %v547_v49 = vpack.c.bf16 %v531_v40, %v531_v40  ;;  %v544_v50 = vpack.c.bf16 %v528_v41, %v528_v41  ;;  %v501_v9 = vperm.slane %v485_v5, 4 }
  0x3a   : > { %759 = vmatpush.bf16.msra.mxu2 %v653_v45  ;;  %788 = vmatpush.bf16.msra.mxu3 %v656_v46  ;;  %v545_v51 = vpack.c.bf16 %v529_v42, %v529_v42  ;;  %v502_v10 = vperm.slane %v485_v5, 6  ;;  %v499_v11 = vperm.slane %v485_v5, 0  ;;  %v500_v12 = vperm.slane %v485_v5, 2 }
  0x3b   : > { %v665_v52 = vsel %vm645_vm1, %v546_v48, 0  ;;  %v668_v53 = vsel %vm645_vm1, %v547_v49, 0  ;;  %v659_v54 = vsel %vm645_vm1, %v544_v50, 0  ;;  %v534_v13 = vsel %vm523_vm0, %v501_v9, 0.0 }
  0x3c   : > { %2523 = vmatmul.msk.bf16.vlgmr.msra.gmra.mxu0 %vm632_vm2, %v3156_v47  ;;  %2527 = vmatmul.msk.bf16.vlgmr.msra.gmra.mxu1 %vm632_vm2, %v3156_v47  ;;  %v662_v55 = vsel %vm645_vm1, %v545_v51, 0  ;;  %v535_v7 = vsel %vm523_vm0, %v502_v10, 0.0  ;;  %v532_v14 = vsel %vm523_vm0, %v499_v11, 0.0  ;;  %v533_v15 = vsel %vm523_vm0, %v500_v12, 0.0 }
  0x3d   : > { %2531 = vmatmul.msk.bf16.vlgmr.msra.gmra.mxu2 %vm632_vm2, %v3156_v47  ;;  %2535 = vmatmul.msk.bf16.vlgmr.msra.gmra.mxu3 %vm632_vm2, %v3156_v47  ;;  %v550_v16 = vpack.c.bf16 %v534_v13, %v534_v13  ;;  %v551_v17 = vpack.c.bf16 %v535_v7, %v535_v7  ;;  %v548_v18 = vpack.c.bf16 %v532_v14, %v532_v14  ;;  %v427_v25 = vunpack.c.h.bf16 %v423_v60 }
  0x3e   : > { %875 = vmatpush.bf16.msrb.mxu2 %v665_v52  ;;  %904 = vmatpush.bf16.msrb.mxu3 %v668_v53  ;;  %v549_v19 = vpack.c.bf16 %v533_v15, %v533_v15  ;;  %v448_v26 = vperm.slane %v2504_v62, %v3122_v8  ;;  %v478_v27 = vperm.slane %v2506_v63, %v3122_v8 }
  0x3f   : > { %817 = vmatpush.bf16.msrb.mxu0 %v659_v54  ;;  %846 = vmatpush.bf16.msrb.mxu1 %v662_v55  ;;  %v677_v21 = vsel %vm645_vm1, %v550_v16, 0  ;;  %v680_v22 = vsel %vm645_vm1, %v551_v17, 0  ;;  %v671_v23 = vsel %vm645_vm1, %v548_v18, 0 }
  0x40   : > { %v674_v24 = vsel %vm645_vm1, %v549_v19, 0  ;;  %v456_v28 = vmul.f32 %v448_v26, %v427_v25 }
  0x42   : > { %991 = vmatpush.bf16.msra.mxu2 %v677_v21  ;;  %1020 = vmatpush.bf16.msra.mxu3 %v680_v22  ;;  %v486_v29 = vadd.f32 %v478_v27, %v456_v28 }
  0x43   : > { %933 = vmatpush.bf16.msra.mxu0 %v671_v23  ;;  %962 = vmatpush.bf16.msra.mxu1 %v674_v24 }
  0x44   : > { %v505_v30 = vperm.slane %v486_v29, 4  ;;  %v506_v31 = vperm.slane %v486_v29, 6  ;;  %v503_v34 = vperm.slane %v486_v29, 0  ;;  %v504_v35 = vperm.slane %v486_v29, 2 }
  0x46   : > { %v538_v32 = vsel %vm523_vm0, %v505_v30, 0.0  ;;  %v539_v33 = vsel %vm523_vm0, %v506_v31, 0.0  ;;  %v536_v38 = vsel %vm523_vm0, %v503_v34, 0.0  ;;  %v537_v39 = vsel %vm523_vm0, %v504_v35, 0.0 }
  0x47   : > { %v554_v36 = vpack.c.bf16 %v538_v32, %v538_v32  ;;  %v555_v37 = vpack.c.bf16 %v539_v33, %v539_v33  ;;  %v552_v41 = vpack.c.bf16 %v536_v38, %v536_v38  ;;  %v553_v42 = vpack.c.bf16 %v537_v39, %v537_v39 }
  0x49   : > { %v689_v40 = vsel %vm645_vm1, %v554_v36, 0  ;;  %v692_v8 = vsel %vm645_vm1, %v555_v37, 0  ;;  %v683_v43 = vsel %vm645_vm1, %v552_v41, 0  ;;  %v686_v44 = vsel %vm645_vm1, %v553_v42, 0 }
  0x4c   : > { %2524 = vmatmul.msk.bf16.gmra.mxu0 %vm632_vm2, %v3176_v57  ;;  %2528 = vmatmul.msk.bf16.gmra.mxu1 %vm632_vm2, %v3176_v57 }
  0x4d   : > { %2532 = vmatmul.msk.bf16.gmra.mxu2 %vm632_vm2, %v3176_v57  ;;  %2536 = vmatmul.msk.bf16.gmra.mxu3 %vm632_vm2, %v3176_v57 }
  0x5c   : > { %2525 = vmatmul.msk.bf16.gmra.mxu0 %vm632_vm2, %v3192_v59  ;;  %2529 = vmatmul.msk.bf16.gmra.mxu1 %vm632_vm2, %v3192_v59 }
  0x5d   : > { %2533 = vmatmul.msk.bf16.gmra.mxu2 %vm632_vm2, %v3192_v59  ;;  %2537 = vmatmul.msk.bf16.gmra.mxu3 %vm632_vm2, %v3192_v59 }
  0x6c   : > { %2526 = vmatmul.msk.bf16.gmra.mxu0 %vm632_vm2, %v3223_v20  ;;  %2530 = vmatmul.msk.bf16.gmra.mxu1 %vm632_vm2, %v3223_v20 }
  0x6d   : > { %2534 = vmatmul.msk.bf16.gmra.mxu2 %vm632_vm2, %v3223_v20  ;;  %2538 = vmatmul.msk.bf16.gmra.mxu3 %vm632_vm2, %v3223_v20 }
  0x7c   : > { %2539 = vmatmul.msk.bf16.vlgmr.msrb.gmra.mxu0 %vm632_vm2, %v3156_v47  ;;  %2543 = vmatmul.msk.bf16.vlgmr.msrb.gmra.mxu1 %vm632_vm2, %v3156_v47 }
  0x7d   : > { %2547 = vmatmul.msk.bf16.vlgmr.msrb.gmra.mxu2 %vm632_vm2, %v3156_v47  ;;  %2551 = vmatmul.msk.bf16.vlgmr.msrb.gmra.mxu3 %vm632_vm2, %v3156_v47 }
  0x7e   : > { %1107 = vmatpush.bf16.msrb.mxu2 %v689_v40  ;;  %1136 = vmatpush.bf16.msrb.mxu3 %v692_v8 }
  0x7f   : > { %1049 = vmatpush.bf16.msrb.mxu0 %v683_v43  ;;  %1078 = vmatpush.bf16.msrb.mxu1 %v686_v44 }
  0x80   : > { %v3331_v41 = vpop.permute.xlu2 %594 }
  0x8c   : > { %2540 = vmatmul.msk.bf16.gmra.mxu0 %vm632_vm2, %v3176_v57  ;;  %2544 = vmatmul.msk.bf16.gmra.mxu1 %vm632_vm2, %v3176_v57 }
  0x8d   : > { %2548 = vmatmul.msk.bf16.gmra.mxu2 %vm632_vm2, %v3176_v57  ;;  %2552 = vmatmul.msk.bf16.gmra.mxu3 %vm632_vm2, %v3176_v57 }
  0x97   : > { %v3279_v48 = vpop.permute.xlu0 %574  ;;  %v3303_v12 = vpop.permute.xlu1 %584 }
  0x9c   : > { %2541 = vmatmul.msk.bf16.gmra.mxu0 %vm632_vm2, %v3192_v59  ;;  %2545 = vmatmul.msk.bf16.gmra.mxu1 %vm632_vm2, %v3192_v59 }
  0x9d   : > { %2549 = vmatmul.msk.bf16.gmra.mxu2 %vm632_vm2, %v3192_v59  ;;  %2553 = vmatmul.msk.bf16.gmra.mxu3 %vm632_vm2, %v3192_v59 }
  0x9f   : > { %v3293_v63 = vpop.permute.xlu0 %579 }
  0xa0   : > { %v3321_v31 = vpop.permute.xlu1 %589 }
  0xac   : > { %2542 = vmatmul.msk.bf16.gmra.mxu0 %vm632_vm2, %v3223_v20  ;;  %2546 = vmatmul.msk.bf16.gmra.mxu1 %vm632_vm2, %v3223_v20 }
  0xad   : > { %2550 = vmatmul.msk.bf16.gmra.mxu2 %vm632_vm2, %v3223_v20  ;;  %2554 = vmatmul.msk.bf16.gmra.mxu3 %vm632_vm2, %v3223_v20 }
  0xb9   : > { %v703_v45 = vpop.f32.mrf.mxu0  ;;  %v732_v46 = vpop.f32.mrf.mxu1 }
  0xba   : > { %v704_v49 = vadd.f32 %v703_v45, %v3279_v48  ;;  %v733_v50 = vadd.f32 %v732_v46, %v3279_v48 }
  0xbc   : > { %2555 = vmatmul.msk.bf16.vlgmr.msra.gmra.mxu0 %vm632_vm2, %v3156_v47  ;;  %2559 = vmatmul.msk.bf16.vlgmr.msra.gmra.mxu1 %vm632_vm2, %v3156_v47  ;;  %v1158_v58 = vmax.f32 %v704_v49, 0.0  ;;  %v1159_v60 = vmax.f32 %v733_v50, 0.0 }
  0xbd   : > { %2563 = vmatmul.msk.bf16.vlgmr.msra.gmra.mxu2 %vm632_vm2, %v3156_v47  ;;  %2567 = vmatmul.msk.bf16.vlgmr.msra.gmra.mxu3 %vm632_vm2, %v3156_v47 }
  0xc0   : > { %v761_v51 = vpop.f32.mrf.mxu2  ;;  %v790_v52 = vpop.f32.mrf.mxu3 }
  0xc1   : > { %v762_v53 = vadd.f32 %v761_v51, %v3279_v48  ;;  %v791_v54 = vadd.f32 %v790_v52, %v3279_v48  ;;  %v705_v55 = vpop.f32.mrf.mxu0  ;;  %v734_v56 = vpop.f32.mrf.mxu1 }
  0xc2   : > { %v706_v2 = vadd.f32 %v705_v55, %v3293_v63  ;;  %v735_v3 = vadd.f32 %v734_v56, %v3293_v63 }
  0xc3   : > { %v1160_v61 = vmax.f32 %v762_v53, 0.0  ;;  %v1161_v62 = vmax.f32 %v791_v54, 0.0 }
  0xc4   : > { %v1174_v13 = vmax.f32 %v706_v2, 0.0  ;;  %v1175_v7 = vmax.f32 %v735_v3, 0.0  ;;  %v3349_v3 = vpop.permute.xlu2 %599 }
  0xc5   : > { %v3295_v0 = vadd.f32 %v1160_v61, %v1158_v58  ;;  %v3297_v1 = vadd.f32 %v1161_v62, %v1159_v60 }
  0xc8   : > { %v763_v4 = vpop.f32.mrf.mxu2  ;;  %v792_v5 = vpop.f32.mrf.mxu3 }
  0xc9   : > { %v764_v6 = vadd.f32 %v763_v4, %v3293_v63  ;;  %v793_v9 = vadd.f32 %v792_v5, %v3293_v63  ;;  %v708_v10 = vpop.f32.mrf.mxu0  ;;  %v737_v11 = vpop.f32.mrf.mxu1 }
  0xca   : > { %v709_v18 = vadd.f32 %v708_v10, %v3303_v12  ;;  %v738_v19 = vadd.f32 %v737_v11, %v3303_v12 }
  0xcb   : > { %v1176_v14 = vmax.f32 %v764_v6, 0.0  ;;  %v1177_v15 = vmax.f32 %v793_v9, 0.0 }
  0xcc   : > { %2556 = vmatmul.msk.bf16.gmra.mxu0 %vm632_vm2, %v3176_v57  ;;  %2560 = vmatmul.msk.bf16.gmra.mxu1 %vm632_vm2, %v3176_v57  ;;  %v1190_v27 = vmax.f32 %v709_v18, 0.0  ;;  %v1191_v28 = vmax.f32 %v738_v19, 0.0 }
  0xcd   : > { %v3309_v16 = vadd.f32 %v1176_v14, %v1174_v13  ;;  %v3311_v17 = vadd.f32 %v1177_v15, %v1175_v7  ;;  %2564 = vmatmul.msk.bf16.gmra.mxu2 %vm632_vm2, %v3176_v57  ;;  %2568 = vmatmul.msk.bf16.gmra.mxu3 %vm632_vm2, %v3176_v57 }
  0xd0   : > { %v766_v21 = vpop.f32.mrf.mxu2  ;;  %v795_v22 = vpop.f32.mrf.mxu3 }
  0xd1   : > { %v767_v23 = vadd.f32 %v766_v21, %v3303_v12  ;;  %v796_v24 = vadd.f32 %v795_v22, %v3303_v12  ;;  %v710_v25 = vpop.f32.mrf.mxu0  ;;  %v739_v26 = vpop.f32.mrf.mxu1 }
  0xd2   : > { %v711_v34 = vadd.f32 %v710_v25, %v3321_v31  ;;  %v740_v35 = vadd.f32 %v739_v26, %v3321_v31 }
  0xd3   : > { %v1192_v29 = vmax.f32 %v767_v23, 0.0  ;;  %v1193_v30 = vmax.f32 %v796_v24, 0.0  ;;  %v3363_v23 = vpop.permute.xlu0 %604 }
  0xd4   : > { %v1206_v42 = vmax.f32 %v711_v34, 0.0  ;;  %v1207_v43 = vmax.f32 %v740_v35, 0.0 }
  0xd5   : > { %v3323_v32 = vadd.f32 %v1192_v29, %v1190_v27  ;;  %v3325_v33 = vadd.f32 %v1193_v30, %v1191_v28 }
  0xd8   : > { %v768_v36 = vpop.f32.mrf.mxu2  ;;  %v797_v37 = vpop.f32.mrf.mxu3 }
  0xd9   : > { %v769_v38 = vadd.f32 %v768_v36, %v3321_v31  ;;  %v798_v39 = vadd.f32 %v797_v37, %v3321_v31  ;;  %v713_v40 = vpop.f32.mrf.mxu0  ;;  %v742_v8 = vpop.f32.mrf.mxu1 }
  0xda   : > { %v714_v50 = vadd.f32 %v713_v40, %v3331_v41  ;;  %v743_v51 = vadd.f32 %v742_v8, %v3331_v41  ;;  %v3377_v8 = vpop.permute.xlu1 %609 }
  0xdb   : > { %v1208_v44 = vmax.f32 %v769_v38, 0.0  ;;  %v1209_v45 = vmax.f32 %v798_v39, 0.0 }
  0xdc   : > { %2557 = vmatmul.msk.bf16.gmra.mxu0 %vm632_vm2, %v3192_v59  ;;  %2561 = vmatmul.msk.bf16.gmra.mxu1 %vm632_vm2, %v3192_v59  ;;  %v1222_v60 = vmax.f32 %v714_v50, 0.0  ;;  %v1223_v61 = vmax.f32 %v743_v51, 0.0 }
  0xdd   : > { %v3337_v46 = vadd.f32 %v1208_v44, %v1206_v42  ;;  %v3339_v49 = vadd.f32 %v1209_v45, %v1207_v43  ;;  %2565 = vmatmul.msk.bf16.gmra.mxu2 %vm632_vm2, %v3192_v59  ;;  %2569 = vmatmul.msk.bf16.gmra.mxu3 %vm632_vm2, %v3192_v59 }
  0xe0   : > { %v771_v52 = vpop.f32.mrf.mxu2  ;;  %v800_v53 = vpop.f32.mrf.mxu3 }
  0xe1   : > { %v772_v54 = vadd.f32 %v771_v52, %v3331_v41  ;;  %v801_v55 = vadd.f32 %v800_v53, %v3331_v41  ;;  %v715_v56 = vpop.f32.mrf.mxu0  ;;  %v744_v58 = vpop.f32.mrf.mxu1 }
  0xe2   : > { %v716_v6 = vadd.f32 %v715_v56, %v3349_v3  ;;  %v745_v9 = vadd.f32 %v744_v58, %v3349_v3 }
  0xe3   : > { %v1224_v62 = vmax.f32 %v772_v54, 0.0  ;;  %v1225_v2 = vmax.f32 %v801_v55, 0.0 }
  0xe4   : > { %v1238_v18 = vmax.f32 %v716_v6, 0.0  ;;  %v1239_v19 = vmax.f32 %v745_v9, 0.0 }
  0xe5   : > { %v3351_v4 = vadd.f32 %v1224_v62, %v1222_v60  ;;  %v3353_v5 = vadd.f32 %v1225_v2, %v1223_v61 }
  0xe8   : > { %v773_v10 = vpop.f32.mrf.mxu2  ;;  %v802_v11 = vpop.f32.mrf.mxu3 }
  0xe9   : > { %v774_v13 = vadd.f32 %v773_v10, %v3349_v3  ;;  %v803_v7 = vadd.f32 %v802_v11, %v3349_v3  ;;  %v718_v14 = vpop.f32.mrf.mxu0  ;;  %v747_v15 = vpop.f32.mrf.mxu1 }
  0xea   : > { %v719_v26 = vadd.f32 %v718_v14, %v3363_v23  ;;  %v748_v27 = vadd.f32 %v747_v15, %v3363_v23 }
  0xeb   : > { %v1240_v21 = vmax.f32 %v774_v13, 0.0  ;;  %v1241_v22 = vmax.f32 %v803_v7, 0.0 }
  0xec   : > { %2558 = vmatmul.msk.bf16.gmra.mxu0 %vm632_vm2, %v3223_v20  ;;  %2562 = vmatmul.msk.bf16.gmra.mxu1 %vm632_vm2, %v3223_v20  ;;  %v1254_v37 = vmax.f32 %v719_v26, 0.0  ;;  %v1255_v39 = vmax.f32 %v748_v27, 0.0 }
  0xed   : > { %v3365_v24 = vadd.f32 %v1240_v21, %v1238_v18  ;;  %v3367_v25 = vadd.f32 %v1241_v22, %v1239_v19  ;;  %2566 = vmatmul.msk.bf16.gmra.mxu2 %vm632_vm2, %v3223_v20  ;;  %2570 = vmatmul.msk.bf16.gmra.mxu3 %vm632_vm2, %v3223_v20 }
  0xf0   : > { %v776_v28 = vpop.f32.mrf.mxu2  ;;  %v805_v29 = vpop.f32.mrf.mxu3 }
  0xf1   : > { %v777_v30 = vadd.f32 %v776_v28, %v3363_v23  ;;  %v806_v34 = vadd.f32 %v805_v29, %v3363_v23  ;;  %v720_v35 = vpop.f32.mrf.mxu0  ;;  %v749_v36 = vpop.f32.mrf.mxu1 }
  0xf2   : > { %v721_v44 = vadd.f32 %v720_v35, %v3377_v8  ;;  %v750_v45 = vadd.f32 %v749_v36, %v3377_v8 }
  0xf3   : > { %v1256_v38 = vmax.f32 %v777_v30, 0.0  ;;  %v1257_v40 = vmax.f32 %v806_v34, 0.0 }
  0xf4   : > { %v1270_v60 = vmax.f32 %v721_v44, 0.0  ;;  %v1271_v61 = vmax.f32 %v750_v45, 0.0 }
  0xf5   : > { %v3379_v42 = vadd.f32 %v1256_v38, %v1254_v37  ;;  %v3381_v43 = vadd.f32 %v1257_v40, %v1255_v39 }
  0xf8   : > { %v778_v50 = vpop.f32.mrf.mxu2  ;;  %v807_v51 = vpop.f32.mrf.mxu3 }
  0xf9   : > { %v779_v52 = vadd.f32 %v778_v50, %v3377_v8  ;;  %v808_v53 = vadd.f32 %v807_v51, %v3377_v8  ;;  %v819_v54 = vpop.f32.mrf.mxu0  ;;  %v848_v55 = vpop.f32.mrf.mxu1 }
  0xfa   : > { %v820_v56 = vadd.f32 %v819_v54, %v3279_v48  ;;  %v849_v58 = vadd.f32 %v848_v55, %v3279_v48 }
  0xfb   : > { %v1272_v62 = vmax.f32 %v779_v52, 0.0  ;;  %v1273_v2 = vmax.f32 %v808_v53, 0.0 }
  0xfc   : > { %v1162_v6 = vmax.f32 %v820_v56, 0.0  ;;  %v1163_v9 = vmax.f32 %v849_v58, 0.0  ;;  %2571 = vmatmul.msk.bf16.vlgmr.msrb.gmra.mxu0 %vm632_vm2, %v3156_v47  ;;  %2575 = vmatmul.msk.bf16.vlgmr.msrb.gmra.mxu1 %vm632_vm2, %v3156_v47 }
  0xfd   : > { %v3393_v10 = vadd.f32 %v1272_v62, %v1270_v60  ;;  %v3395_v11 = vadd.f32 %v1273_v2, %v1271_v61  ;;  %2579 = vmatmul.msk.bf16.vlgmr.msrb.gmra.mxu2 %vm632_vm2, %v3156_v47  ;;  %2583 = vmatmul.msk.bf16.vlgmr.msrb.gmra.mxu3 %vm632_vm2, %v3156_v47 }
  0xfe   : > { %v1302_v13 = vadd.f32 %v3295_v0, %v1162_v6  ;;  %v1303_v7 = vadd.f32 %v3297_v1, %v1163_v9 }
 0x100   : > { %v877_v14 = vpop.f32.mrf.mxu2  ;;  %v906_v15 = vpop.f32.mrf.mxu3 }
 0x101   : > { %v878_v18 = vadd.f32 %v877_v14, %v3279_v48  ;;  %v907_v19 = vadd.f32 %v906_v15, %v3279_v48  ;;  %v821_v21 = vpop.f32.mrf.mxu0  ;;  %v850_v22 = vpop.f32.mrf.mxu1 }
 0x102   : > { %v822_v26 = vadd.f32 %v821_v21, %v3293_v63  ;;  %v851_v27 = vadd.f32 %v850_v22, %v3293_v63 }
 0x103   : > { %v1164_v28 = vmax.f32 %v878_v18, 0.0  ;;  %v1165_v29 = vmax.f32 %v907_v19, 0.0 }
 0x104   : > { %v1178_v30 = vmax.f32 %v822_v26, 0.0  ;;  %v1179_v47 = vmax.f32 %v851_v27, 0.0 }
 0x105   : > { %v3407_v34 = vadd.f32 %v1302_v13, %v1164_v28  ;;  %v3409_v0 = vadd.f32 %v1303_v7, %v1165_v29 }
 0x106   : > { %v1304_v1 = vadd.f32 %v3309_v16, %v1178_v30  ;;  %v1305_v35 = vadd.f32 %v3311_v17, %v1179_v47 }
 0x108   : > { %v879_v36 = vpop.f32.mrf.mxu2  ;;  %v908_v37 = vpop.f32.mrf.mxu3 }
 0x109   : > { %v880_v38 = vadd.f32 %v879_v36, %v3293_v63  ;;  %v909_v39 = vadd.f32 %v908_v37, %v3293_v63  ;;  %v824_v40 = vpop.f32.mrf.mxu0  ;;  %v853_v44 = vpop.f32.mrf.mxu1 }
 0x10a   : > { %v825_v45 = vadd.f32 %v824_v40, %v3303_v12  ;;  %v854_v50 = vadd.f32 %v853_v44, %v3303_v12 }
 0x10b   : > { %v1180_v51 = vmax.f32 %v880_v38, 0.0  ;;  %v1181_v52 = vmax.f32 %v909_v39, 0.0 }
 0x10c   : > { %v1194_v53 = vmax.f32 %v825_v45, 0.0  ;;  %v1195_v54 = vmax.f32 %v854_v50, 0.0  ;;  %2572 = vmatmul.msk.bf16.gmra.mxu0 %vm632_vm2, %v3176_v57  ;;  %2576 = vmatmul.msk.bf16.gmra.mxu1 %vm632_vm2, %v3176_v57 }
 0x10d   : > { %v3421_v16 = vadd.f32 %v1304_v1, %v1180_v51  ;;  %v3423_v17 = vadd.f32 %v1305_v35, %v1181_v52  ;;  %2580 = vmatmul.msk.bf16.gmra.mxu2 %vm632_vm2, %v3176_v57  ;;  %2584 = vmatmul.msk.bf16.gmra.mxu3 %vm632_vm2, %v3176_v57 }
 0x10e   : > { %v1306_v55 = vadd.f32 %v3323_v32, %v1194_v53  ;;  %v1307_v56 = vadd.f32 %v3325_v33, %v1195_v54 }
 0x110   : > { %v882_v58 = vpop.f32.mrf.mxu2  ;;  %v911_v60 = vpop.f32.mrf.mxu3 }
 0x111   : > { %v883_v61 = vadd.f32 %v882_v58, %v3303_v12  ;;  %v912_v62 = vadd.f32 %v911_v60, %v3303_v12  ;;  %v826_v2 = vpop.f32.mrf.mxu0  ;;  %v855_v6 = vpop.f32.mrf.mxu1 }
 0x112   : > { %v827_v9 = vadd.f32 %v826_v2, %v3321_v31  ;;  %v856_v13 = vadd.f32 %v855_v6, %v3321_v31 }
 0x113   : > { %v1196_v7 = vmax.f32 %v883_v61, 0.0  ;;  %v1197_v14 = vmax.f32 %v912_v62, 0.0 }
 0x114   : > { %v1210_v15 = vmax.f32 %v827_v9, 0.0  ;;  %v1211_v57 = vmax.f32 %v856_v13, 0.0 }
 0x115   : > { %v3435_v18 = vadd.f32 %v1306_v55, %v1196_v7  ;;  %v3437_v32 = vadd.f32 %v1307_v56, %v1197_v14 }
 0x116   : > { %v1308_v33 = vadd.f32 %v3337_v46, %v1210_v15  ;;  %v1309_v19 = vadd.f32 %v3339_v49, %v1211_v57 }
 0x118   : > { %v884_v21 = vpop.f32.mrf.mxu2  ;;  %v913_v22 = vpop.f32.mrf.mxu3 }
 0x119   : > { %v885_v26 = vadd.f32 %v884_v21, %v3321_v31  ;;  %v914_v27 = vadd.f32 %v913_v22, %v3321_v31  ;;  %v829_v28 = vpop.f32.mrf.mxu0  ;;  %v858_v29 = vpop.f32.mrf.mxu1 }
 0x11a   : > { %v830_v30 = vadd.f32 %v829_v28, %v3331_v41  ;;  %v859_v47 = vadd.f32 %v858_v29, %v3331_v41 }
 0x11b   : > { %v1212_v1 = vmax.f32 %v885_v26, 0.0  ;;  %v1213_v35 = vmax.f32 %v914_v27, 0.0 }
 0x11c   : > { %v1226_v36 = vmax.f32 %v830_v30, 0.0  ;;  %v1227_v37 = vmax.f32 %v859_v47, 0.0  ;;  %2573 = vmatmul.msk.bf16.gmra.mxu0 %vm632_vm2, %v3192_v59  ;;  %2577 = vmatmul.msk.bf16.gmra.mxu1 %vm632_vm2, %v3192_v59 }
 0x11d   : > { %v3449_v46 = vadd.f32 %v1308_v33, %v1212_v1  ;;  %v3451_v49 = vadd.f32 %v1309_v19, %v1213_v35  ;;  %2581 = vmatmul.msk.bf16.gmra.mxu2 %vm632_vm2, %v3192_v59  ;;  %2585 = vmatmul.msk.bf16.gmra.mxu3 %vm632_vm2, %v3192_v59 }
 0x11e   : > { %v1310_v38 = vadd.f32 %v3351_v4, %v1226_v36  ;;  %v1311_v39 = vadd.f32 %v3353_v5, %v1227_v37 }
 0x120   : > { %v887_v40 = vpop.f32.mrf.mxu2  ;;  %v916_v44 = vpop.f32.mrf.mxu3 }
 0x121   : > { %v888_v45 = vadd.f32 %v887_v40, %v3331_v41  ;;  %v917_v50 = vadd.f32 %v916_v44, %v3331_v41  ;;  %v831_v51 = vpop.f32.mrf.mxu0  ;;  %v860_v52 = vpop.f32.mrf.mxu1 }
 0x122   : > { %v832_v53 = vadd.f32 %v831_v51, %v3349_v3  ;;  %v861_v54 = vadd.f32 %v860_v52, %v3349_v3 }
 0x123   : > { %v1228_v55 = vmax.f32 %v888_v45, 0.0  ;;  %v1229_v56 = vmax.f32 %v917_v50, 0.0 }
 0x124   : > { %v1242_v58 = vmax.f32 %v832_v53, 0.0  ;;  %v1243_v59 = vmax.f32 %v861_v54, 0.0 }
 0x125   : > { %v3463_v60 = vadd.f32 %v1310_v38, %v1228_v55  ;;  %v3465_v4 = vadd.f32 %v1311_v39, %v1229_v56 }
 0x126   : > { %v1312_v5 = vadd.f32 %v3365_v24, %v1242_v58  ;;  %v1313_v61 = vadd.f32 %v3367_v25, %v1243_v59 }
 0x128   : > { %v889_v62 = vpop.f32.mrf.mxu2  ;;  %v918_v2 = vpop.f32.mrf.mxu3 }
 0x129   : > { %v890_v6 = vadd.f32 %v889_v62, %v3349_v3  ;;  %v919_v9 = vadd.f32 %v918_v2, %v3349_v3  ;;  %v834_v13 = vpop.f32.mrf.mxu0  ;;  %v863_v7 = vpop.f32.mrf.mxu1 }
 0x12a   : > { %v835_v14 = vadd.f32 %v834_v13, %v3363_v23  ;;  %v864_v15 = vadd.f32 %v863_v7, %v3363_v23 }
 0x12b   : > { %v1244_v57 = vmax.f32 %v890_v6, 0.0  ;;  %v1245_v33 = vmax.f32 %v919_v9, 0.0 }
 0x12c   : > { %v1258_v19 = vmax.f32 %v835_v14, 0.0  ;;  %v1259_v21 = vmax.f32 %v864_v15, 0.0  ;;  %2574 = vmatmul.msk.bf16.gmra.mxu0 %vm632_vm2, %v3223_v20  ;;  %2578 = vmatmul.msk.bf16.gmra.mxu1 %vm632_vm2, %v3223_v20 }
 0x12d   : > { %v3477_v24 = vadd.f32 %v1312_v5, %v1244_v57  ;;  %v3479_v25 = vadd.f32 %v1313_v61, %v1245_v33  ;;  %2582 = vmatmul.msk.bf16.gmra.mxu2 %vm632_vm2, %v3223_v20  ;;  %2586 = vmatmul.msk.bf16.gmra.mxu3 %vm632_vm2, %v3223_v20 }
 0x12e   : > { %v1314_v22 = vadd.f32 %v3379_v42, %v1258_v19  ;;  %v1315_v26 = vadd.f32 %v3381_v43, %v1259_v21 }
 0x130   : > { %v892_v27 = vpop.f32.mrf.mxu2  ;;  %v921_v28 = vpop.f32.mrf.mxu3 }
 0x131   : > { %v893_v29 = vadd.f32 %v892_v27, %v3363_v23  ;;  %v922_v30 = vadd.f32 %v921_v28, %v3363_v23  ;;  %v836_v47 = vpop.f32.mrf.mxu0  ;;  %v865_v1 = vpop.f32.mrf.mxu1 }
 0x132   : > { %v837_v35 = vadd.f32 %v836_v47, %v3377_v8  ;;  %v866_v36 = vadd.f32 %v865_v1, %v3377_v8 }
 0x133   : > { %v1260_v37 = vmax.f32 %v893_v29, 0.0  ;;  %v1261_v38 = vmax.f32 %v922_v30, 0.0 }
 0x134   : > { %v1274_v39 = vmax.f32 %v837_v35, 0.0  ;;  %v1275_v20 = vmax.f32 %v866_v36, 0.0 }
 0x135   : > { %v3491_v40 = vadd.f32 %v1314_v22, %v1260_v37  ;;  %v3493_v42 = vadd.f32 %v1315_v26, %v1261_v38 }
 0x136   : > { %v1316_v43 = vadd.f32 %v3393_v10, %v1274_v39  ;;  %v1317_v44 = vadd.f32 %v3395_v11, %v1275_v20 }
 0x138   : > { %v894_v45 = vpop.f32.mrf.mxu2  ;;  %v923_v50 = vpop.f32.mrf.mxu3 }
 0x139   : > { %v895_v51 = vadd.f32 %v894_v45, %v3377_v8  ;;  %v924_v52 = vadd.f32 %v923_v50, %v3377_v8  ;;  %v935_v53 = vpop.f32.mrf.mxu0  ;;  %v964_v54 = vpop.f32.mrf.mxu1 }
 0x13a   : > { %v936_v55 = vadd.f32 %v935_v53, %v3279_v48  ;;  %v965_v56 = vadd.f32 %v964_v54, %v3279_v48 }
 0x13b   : > { %v1276_v58 = vmax.f32 %v895_v51, 0.0  ;;  %v1277_v59 = vmax.f32 %v924_v52, 0.0 }
 0x13c   : > { %v1166_v5 = vmax.f32 %v936_v55, 0.0  ;;  %v1167_v61 = vmax.f32 %v965_v56, 0.0 }
 0x13d   : > { %v3501_v62 = vadd.f32 %v1316_v43, %v1276_v58  ;;  %v3503_v10 = vadd.f32 %v1317_v44, %v1277_v59 }
 0x13e   : > { %v1334_v11 = vadd.f32 %v3407_v34, %v1166_v5  ;;  %v1335_v2 = vadd.f32 %v3409_v0, %v1167_v61 }
 0x140   : > { %v993_v6 = vpop.f32.mrf.mxu2  ;;  %v1022_v9 = vpop.f32.mrf.mxu3 }
 0x141   : > { %v994_v13 = vadd.f32 %v993_v6, %v3279_v48  ;;  %v1023_v7 = vadd.f32 %v1022_v9, %v3279_v48  ;;  %v937_v14 = vpop.f32.mrf.mxu0  ;;  %v966_v15 = vpop.f32.mrf.mxu1 }
 0x142   : > { %v938_v57 = vadd.f32 %v937_v14, %v3293_v63  ;;  %v967_v33 = vadd.f32 %v966_v15, %v3293_v63 }
 0x143   : > { %v1168_v19 = vmax.f32 %v994_v13, 0.0  ;;  %v1169_v21 = vmax.f32 %v1023_v7, 0.0 }
 0x144   : > { %v1182_v22 = vmax.f32 %v938_v57, 0.0  ;;  %v1183_v26 = vmax.f32 %v967_v33, 0.0 }
 0x145   : > { %v3511_v27 = vadd.f32 %v1334_v11, %v1168_v19  ;;  %v3513_v34 = vadd.f32 %v1335_v2, %v1169_v21 }
 0x146   : > { %v1336_v0 = vadd.f32 %v3421_v16, %v1182_v22  ;;  %v1337_v28 = vadd.f32 %v3423_v17, %v1183_v26 }
 0x148   : > { %v995_v29 = vpop.f32.mrf.mxu2  ;;  %v1024_v30 = vpop.f32.mrf.mxu3 }
 0x149   : > { %v996_v47 = vadd.f32 %v995_v29, %v3293_v63  ;;  %v1025_v1 = vadd.f32 %v1024_v30, %v3293_v63  ;;  %v940_v35 = vpop.f32.mrf.mxu0  ;;  %v969_v36 = vpop.f32.mrf.mxu1 }
 0x14a   : > { %v941_v37 = vadd.f32 %v940_v35, %v3303_v12  ;;  %v970_v38 = vadd.f32 %v969_v36, %v3303_v12 }
 0x14b   : > { %v1184_v39 = vmax.f32 %v996_v47, 0.0  ;;  %v1185_v20 = vmax.f32 %v1025_v1, 0.0 }
 0x14c   : > { %v1198_v43 = vmax.f32 %v941_v37, 0.0  ;;  %v1199_v44 = vmax.f32 %v970_v38, 0.0 }
 0x14d   : > { %v3521_v45 = vadd.f32 %v1336_v0, %v1184_v39  ;;  %v3523_v16 = vadd.f32 %v1337_v28, %v1185_v20 }
 0x14e   : > { %v1338_v17 = vadd.f32 %v3435_v18, %v1198_v43  ;;  %v1339_v50 = vadd.f32 %v3437_v32, %v1199_v44 }
 0x150   : > { %v998_v51 = vpop.f32.mrf.mxu2  ;;  %v1027_v52 = vpop.f32.mrf.mxu3 }
 0x151   : > { %v999_v53 = vadd.f32 %v998_v51, %v3303_v12  ;;  %v1028_v54 = vadd.f32 %v1027_v52, %v3303_v12  ;;  %v942_v55 = vpop.f32.mrf.mxu0  ;;  %v971_v56 = vpop.f32.mrf.mxu1 }
 0x152   : > { %v943_v58 = vadd.f32 %v942_v55, %v3321_v31  ;;  %v972_v59 = vadd.f32 %v971_v56, %v3321_v31 }
 0x153   : > { %v1200_v5 = vmax.f32 %v999_v53, 0.0  ;;  %v1201_v61 = vmax.f32 %v1028_v54, 0.0 }
 0x154   : > { %v1214_v11 = vmax.f32 %v943_v58, 0.0  ;;  %v1215_v2 = vmax.f32 %v972_v59, 0.0 }
 0x155   : > { %v3531_v6 = vadd.f32 %v1338_v17, %v1200_v5  ;;  %v3533_v18 = vadd.f32 %v1339_v50, %v1201_v61 }
 0x156   : > { %v1340_v32 = vadd.f32 %v3449_v46, %v1214_v11  ;;  %v1341_v9 = vadd.f32 %v3451_v49, %v1215_v2 }
 0x158   : > { %v1000_v13 = vpop.f32.mrf.mxu2  ;;  %v1029_v7 = vpop.f32.mrf.mxu3 }
 0x159   : > { %v1001_v14 = vadd.f32 %v1000_v13, %v3321_v31  ;;  %v1030_v15 = vadd.f32 %v1029_v7, %v3321_v31  ;;  %v945_v57 = vpop.f32.mrf.mxu0  ;;  %v974_v33 = vpop.f32.mrf.mxu1 }
 0x15a   : > { %v946_v19 = vadd.f32 %v945_v57, %v3331_v41  ;;  %v975_v21 = vadd.f32 %v974_v33, %v3331_v41 }
 0x15b   : > { %v1216_v22 = vmax.f32 %v1001_v14, 0.0  ;;  %v1217_v26 = vmax.f32 %v1030_v15, 0.0 }
 0x15c   : > { %v1230_v0 = vmax.f32 %v946_v19, 0.0  ;;  %v1231_v28 = vmax.f32 %v975_v21, 0.0 }
 0x15d   : > { %v3541_v29 = vadd.f32 %v1340_v32, %v1216_v22  ;;  %v3543_v46 = vadd.f32 %v1341_v9, %v1217_v26 }
 0x15e   : > { %v1342_v49 = vadd.f32 %v3463_v60, %v1230_v0  ;;  %v1343_v30 = vadd.f32 %v3465_v4, %v1231_v28 }
 0x160   : > { %v1003_v47 = vpop.f32.mrf.mxu2  ;;  %v1032_v1 = vpop.f32.mrf.mxu3 }
 0x161   : > { %v1004_v35 = vadd.f32 %v1003_v47, %v3331_v41  ;;  %v1033_v36 = vadd.f32 %v1032_v1, %v3331_v41  ;;  %v947_v37 = vpop.f32.mrf.mxu0  ;;  %v976_v38 = vpop.f32.mrf.mxu1 }
 0x162   : > { %v948_v39 = vadd.f32 %v947_v37, %v3349_v3  ;;  %v977_v20 = vadd.f32 %v976_v38, %v3349_v3 }
 0x163   : > { %v1232_v43 = vmax.f32 %v1004_v35, 0.0  ;;  %v1233_v44 = vmax.f32 %v1033_v36, 0.0 }
 0x164   : > { %v1246_v17 = vmax.f32 %v948_v39, 0.0  ;;  %v1247_v50 = vmax.f32 %v977_v20, 0.0 }
 0x165   : > { %v3551_v51 = vadd.f32 %v1342_v49, %v1232_v43  ;;  %v3553_v60 = vadd.f32 %v1343_v30, %v1233_v44 }
 0x166   : > { %v1344_v4 = vadd.f32 %v3477_v24, %v1246_v17  ;;  %v1345_v52 = vadd.f32 %v3479_v25, %v1247_v50 }
 0x168   : > { %v1005_v53 = vpop.f32.mrf.mxu2  ;;  %v1034_v54 = vpop.f32.mrf.mxu3 }
 0x169   : > { %v1006_v55 = vadd.f32 %v1005_v53, %v3349_v3  ;;  %v1035_v56 = vadd.f32 %v1034_v54, %v3349_v3  ;;  %v950_v58 = vpop.f32.mrf.mxu0  ;;  %v979_v59 = vpop.f32.mrf.mxu1 }
 0x16a   : > { %v951_v5 = vadd.f32 %v950_v58, %v3363_v23  ;;  %v980_v61 = vadd.f32 %v979_v59, %v3363_v23 }
 0x16b   : > { %v1248_v11 = vmax.f32 %v1006_v55, 0.0  ;;  %v1249_v2 = vmax.f32 %v1035_v56, 0.0 }
 0x16c   : > { %v1262_v32 = vmax.f32 %v951_v5, 0.0  ;;  %v1263_v9 = vmax.f32 %v980_v61, 0.0 }
 0x16d   : > { %v3561_v13 = vadd.f32 %v1344_v4, %v1248_v11  ;;  %v3563_v24 = vadd.f32 %v1345_v52, %v1249_v2 }
 0x16e   : > { %v1346_v25 = vadd.f32 %v3491_v40, %v1262_v32  ;;  %v1347_v7 = vadd.f32 %v3493_v42, %v1263_v9 }
 0x170   : > { %v1008_v14 = vpop.f32.mrf.mxu2  ;;  %v1037_v15 = vpop.f32.mrf.mxu3 }
 0x171   : > { %v1009_v57 = vadd.f32 %v1008_v14, %v3363_v23  ;;  %v1038_v33 = vadd.f32 %v1037_v15, %v3363_v23  ;;  %v3569_v19 = vpop.f32.mrf.mxu0  ;;  %v3571_v21 = vpop.f32.mrf.mxu1 }
 0x173   : > { %v1264_v22 = vmax.f32 %v1009_v57, 0.0  ;;  %v1265_v26 = vmax.f32 %v1038_v33, 0.0 }
 0x175   : > { %v3573_v0 = vadd.f32 %v1346_v25, %v1264_v22  ;;  %v3575_v28 = vadd.f32 %v1347_v7, %v1265_v26 }
 0x178   : > { %v3577_v49 = vpop.f32.mrf.mxu2  ;;  %v3579_v40 = vpop.f32.mrf.mxu3 }
 0x179   : > { %v1051_v42 = vpop.f32.mrf.mxu0  ;;  %v1080_v30 = vpop.f32.mrf.mxu1 }
 0x17a   : > { %v1052_v47 = vadd.f32 %v1051_v42, %v3279_v48  ;;  %v1081_v1 = vadd.f32 %v1080_v30, %v3279_v48 }
 0x17c   : > { %v1170_v35 = vmax.f32 %v1052_v47, 0.0  ;;  %v1171_v36 = vmax.f32 %v1081_v1, 0.0 }
 0x17e   : > { %v1366_v17 = vadd.f32 %v3511_v27, %v1170_v35  ;;  %v1367_v50 = vadd.f32 %v3513_v34, %v1171_v36 }
 0x180   : > { %v1109_v37 = vpop.f32.mrf.mxu2  ;;  %v1138_v38 = vpop.f32.mrf.mxu3 }
 0x181   : > { %v1110_v39 = vadd.f32 %v1109_v37, %v3279_v48  ;;  %v1139_v20 = vadd.f32 %v1138_v38, %v3279_v48  ;;  %v1053_v43 = vpop.f32.mrf.mxu0  ;;  %v1082_v44 = vpop.f32.mrf.mxu1 }
 0x182   : > { %v1054_v53 = vadd.f32 %v1053_v43, %v3293_v63  ;;  %v1083_v54 = vadd.f32 %v1082_v44, %v3293_v63 }
 0x183   : > { %v1172_v4 = vmax.f32 %v1110_v39, 0.0  ;;  %v1173_v52 = vmax.f32 %v1139_v20, 0.0 }
 0x184   : > { %v1186_v58 = vmax.f32 %v1054_v53, 0.0  ;;  %v1187_v59 = vmax.f32 %v1083_v54, 0.0 }
 0x185   : > { %v3589_v55 = vadd.f32 %v1366_v17, %v1172_v4  ;;  %v3591_v56 = vadd.f32 %v1367_v50, %v1173_v52 }
 0x186   : > { %v1368_v9 = vadd.f32 %v3521_v45, %v1186_v58  ;;  %v1369_v25 = vadd.f32 %v3523_v16, %v1187_v59 }
 0x188   : > { %v1111_v5 = vpop.f32.mrf.mxu2  ;;  %v1140_v48 = vpop.f32.mrf.mxu3 }
 0x189   : > { %v1112_v61 = vadd.f32 %v1111_v5, %v3293_v63  ;;  %v1141_v27 = vadd.f32 %v1140_v48, %v3293_v63  ;;  %v1056_v11 = vpop.f32.mrf.mxu0  ;;  %v1085_v34 = vpop.f32.mrf.mxu1 }
 0x18a   : > { %v1057_v2 = vadd.f32 %v1056_v11, %v3303_v12  ;;  %v1086_v32 = vadd.f32 %v1085_v34, %v3303_v12 }
 0x18b   : > { %v1188_v7 = vmax.f32 %v1112_v61, 0.0  ;;  %v1189_v14 = vmax.f32 %v1141_v27, 0.0 }
 0x18c   : > { %v1202_v33 = vmax.f32 %v1057_v2, 0.0  ;;  %v1203_v22 = vmax.f32 %v1086_v32, 0.0 }
 0x18d   : > { %v3599_v15 = vadd.f32 %v1368_v9, %v1188_v7  ;;  %v3601_v57 = vadd.f32 %v1369_v25, %v1189_v14 }
 0x18e   : > { %v1370_v45 = vadd.f32 %v3531_v6, %v1202_v33  ;;  %v1371_v16 = vadd.f32 %v3533_v18, %v1203_v22 }
 0x190   : > { %v1114_v26 = vpop.f32.mrf.mxu2  ;;  %v1143_v63 = vpop.f32.mrf.mxu3 }
 0x191   : > { %v1115_v42 = vadd.f32 %v1114_v26, %v3303_v12  ;;  %v1144_v30 = vadd.f32 %v1143_v63, %v3303_v12  ;;  %v1058_v47 = vpop.f32.mrf.mxu0  ;;  %v1087_v1 = vpop.f32.mrf.mxu1 }
 0x192   : > { %v1059_v37 = vadd.f32 %v1058_v47, %v3321_v31  ;;  %v1088_v38 = vadd.f32 %v1087_v1, %v3321_v31 }
 0x193   : > { %v1204_v35 = vmax.f32 %v1115_v42, 0.0  ;;  %v1205_v36 = vmax.f32 %v1144_v30, 0.0 }
 0x194   : > { %v1218_v43 = vmax.f32 %v1059_v37, 0.0  ;;  %v1219_v44 = vmax.f32 %v1088_v38, 0.0 }
 0x195   : > { %v3609_v39 = vadd.f32 %v1370_v45, %v1204_v35  ;;  %v3611_v20 = vadd.f32 %v1371_v16, %v1205_v36 }
 0x196   : > { %v1372_v54 = vadd.f32 %v3541_v29, %v1218_v43  ;;  %v1373_v58 = vadd.f32 %v3543_v46, %v1219_v44 }
 0x198   : > { %v1116_v17 = vpop.f32.mrf.mxu2  ;;  %v1145_v12 = vpop.f32.mrf.mxu3 }
 0x199   : > { %v1117_v50 = vadd.f32 %v1116_v17, %v3321_v31  ;;  %v1146_v6 = vadd.f32 %v1145_v12, %v3321_v31  ;;  %v1061_v4 = vpop.f32.mrf.mxu0  ;;  %v1090_v18 = vpop.f32.mrf.mxu1  ;;  %v953_v12 = vadd.f32 %v3569_v19, %v3377_v8 }
 0x19a   : > { %v1062_v52 = vadd.f32 %v1061_v4, %v3331_v41  ;;  %v1091_v53 = vadd.f32 %v1090_v18, %v3331_v41 }
 0x19b   : > { %v1220_v59 = vmax.f32 %v1117_v50, 0.0  ;;  %v1221_v5 = vmax.f32 %v1146_v6, 0.0  ;;  %v1278_v19 = vmax.f32 %v953_v12, 0.0 }
 0x19c   : > { %v1234_v27 = vmax.f32 %v1062_v52, 0.0  ;;  %v1235_v11 = vmax.f32 %v1091_v53, 0.0 }
 0x19d   : > { %v3619_v48 = vadd.f32 %v1372_v54, %v1220_v59  ;;  %v3621_v61 = vadd.f32 %v1373_v58, %v1221_v5 }
 0x19e   : > { %v1374_v29 = vadd.f32 %v3551_v51, %v1234_v27  ;;  %v1375_v46 = vadd.f32 %v3553_v60, %v1235_v11 }
 0x1a0   : > { %v1119_v34 = vpop.f32.mrf.mxu2  ;;  %v1148_v31 = vpop.f32.mrf.mxu3 }
 0x1a1   : > { %v1120_v2 = vadd.f32 %v1119_v34, %v3331_v41  ;;  %v1149_v32 = vadd.f32 %v1148_v31, %v3331_v41  ;;  %v1063_v9 = vpop.f32.mrf.mxu0  ;;  %v1092_v25 = vpop.f32.mrf.mxu1 }
 0x1a2   : > { %v1064_v33 = vadd.f32 %v1063_v9, %v3349_v3  ;;  %v1093_v22 = vadd.f32 %v1092_v25, %v3349_v3 }
 0x1a3   : > { %v1236_v7 = vmax.f32 %v1120_v2, 0.0  ;;  %v1237_v14 = vmax.f32 %v1149_v32, 0.0 }
 0x1a4   : > { %v1250_v42 = vmax.f32 %v1064_v33, 0.0  ;;  %v1251_v30 = vmax.f32 %v1093_v22, 0.0 }
 0x1a5   : > { %v3629_v26 = vadd.f32 %v1374_v29, %v1236_v7  ;;  %v3631_v63 = vadd.f32 %v1375_v46, %v1237_v14 }
 0x1a6   : > { %v1376_v36 = vadd.f32 %v3561_v13, %v1250_v42  ;;  %v1377_v37 = vadd.f32 %v3563_v24, %v1251_v30  ;;  %v1011_v13 = vadd.f32 %v3577_v49, %v3377_v8  ;;  %v1040_v24 = vadd.f32 %v3579_v40, %v3377_v8 }
 0x1a8   : > { %v1121_v47 = vpop.f32.mrf.mxu2  ;;  %v1150_v41 = vpop.f32.mrf.mxu3  ;;  %v1280_v31 = vmax.f32 %v1011_v13, 0.0  ;;  %v1281_v40 = vmax.f32 %v1040_v24, 0.0 }
 0x1a9   : > { %v1122_v1 = vadd.f32 %v1121_v47, %v3349_v3  ;;  %v1151_v51 = vadd.f32 %v1150_v41, %v3349_v3  ;;  %v1066_v45 = vpop.f32.mrf.mxu0  ;;  %v1095_v60 = vpop.f32.mrf.mxu1  ;;  %v982_v3 = vadd.f32 %v3571_v21, %v3377_v8 }
 0x1aa   : > { %v1067_v16 = vadd.f32 %v1066_v45, %v3363_v23  ;;  %v1096_v35 = vadd.f32 %v1095_v60, %v3363_v23 }
 0x1ab   : > { %v1252_v38 = vmax.f32 %v1122_v1, 0.0  ;;  %v1253_v43 = vmax.f32 %v1151_v51, 0.0  ;;  %v1279_v59 = vmax.f32 %v982_v3, 0.0 }
 0x1ac   : > { %v1266_v50 = vmax.f32 %v1067_v16, 0.0  ;;  %v1267_v6 = vmax.f32 %v1096_v35, 0.0 }
 0x1ad   : > { %v3639_v44 = vadd.f32 %v1376_v36, %v1252_v38  ;;  %v3641_v17 = vadd.f32 %v1377_v37, %v1253_v43  ;;  %v1349_v9 = vadd.f32 %v3503_v10, %v1279_v59 }
 0x1ae   : > { %v1378_v21 = vadd.f32 %v3573_v0, %v1266_v50  ;;  %v1379_v5 = vadd.f32 %v3575_v28, %v1267_v6 }
 0x1af   : > { %v1365_v7 = vadd.f32 %v1349_v9, %v1281_v40 }
 0x1b0   : > { %v1124_v4 = vpop.f32.mrf.mxu2  ;;  %v1153_v18 = vpop.f32.mrf.mxu3 }
 0x1b1   : > { %v1125_v52 = vadd.f32 %v1124_v4, %v3363_v23  ;;  %v1154_v53 = vadd.f32 %v1153_v18, %v3363_v23  ;;  %v1068_v54 = vpop.f32.mrf.mxu0  ;;  %v1097_v58 = vpop.f32.mrf.mxu1  ;;  %v1348_v23 = vadd.f32 %v3501_v62, %v1278_v19 }
 0x1b2   : > { %v1069_v34 = vadd.f32 %v1068_v54, %v3377_v8  ;;  %v1098_v49 = vadd.f32 %v1097_v58, %v3377_v8 }
 0x1b3   : > { %v1268_v27 = vmax.f32 %v1125_v52, 0.0  ;;  %v1269_v11 = vmax.f32 %v1154_v53, 0.0  ;;  %v1364_v46 = vadd.f32 %v1348_v23, %v1280_v31 }
 0x1b4   : > { %v1282_v0 = vmax.f32 %v1069_v34, 0.0  ;;  %v1283_v28 = vmax.f32 %v1098_v49, 0.0 }
 0x1b5   : > { %v3657_v2 = vadd.f32 %v1378_v21, %v1268_v27  ;;  %v3659_v32 = vadd.f32 %v1379_v5, %v1269_v11 }
 0x1b6   : > { %v1380_v22 = vadd.f32 %v1364_v46, %v1282_v0  ;;  %v1381_v42 = vadd.f32 %v1365_v7, %v1283_v28 }
 0x1b8   : > { %v1126_v25 = vpop.f32.mrf.mxu2  ;;  %v1155_v29 = vpop.f32.mrf.mxu3 }
 0x1b9   : > { %v1127_v14 = vadd.f32 %v1126_v25, %v3377_v8  ;;  %v1156_v33 = vadd.f32 %v1155_v29, %v3377_v8  ;;  %1401 = sbr.rel (%p2587_p1) target bundleno = 462 (0x1ce), region = 56 }
 0x1bb   : > { %v1284_v30 = vmax.f32 %v1127_v14, 0.0  ;;  %v1285_v47 = vmax.f32 %v1156_v33, 0.0 }
 0x1bd   : > { %v3665_v62 = vadd.f32 %v1380_v22, %v1284_v30  ;;  %v3667_v41 = vadd.f32 %v1381_v42, %v1285_v47 }
 0x1be   : > { %1402 = vst [vmem:[#allocation2 + $0x30] sm:$0xff] %v3589_v55 }
 0x1bf   : > { %1403 = vst [vmem:[#allocation2] sm:$0xff] %v3591_v56 }
 0x1c0   : > { %1404 = vst [vmem:[#allocation2 + $0x58] sm:$0xff] %v3599_v15 }
 0x1c1   : > { %1405 = vst [vmem:[#allocation2 + $0x18] sm:$0xff] %v3601_v57 }
 0x1c2   : > { %1406 = vst [vmem:[#allocation2 + $0x50] sm:$0xff] %v3609_v39 }
 0x1c3   : > { %1407 = vst [vmem:[#allocation2 + $0x68] sm:$0xff] %v3611_v20 }
 0x1c4   : > { %1408 = vst [vmem:[#allocation2 + $0x8] sm:$0xff] %v3619_v48 }
 0x1c5   : > { %1409 = vst [vmem:[#allocation2 + $0x48] sm:$0xff] %v3621_v61 }
 0x1c6   : > { %1410 = vst [vmem:[#allocation2 + $0x40] sm:$0xff] %v3629_v26 }
 0x1c7   : > { %1411 = vst [vmem:[#allocation2 + $0x20] sm:$0xff] %v3631_v63 }
 0x1c8   : > { %1412 = vst [vmem:[#allocation2 + $0x10] sm:$0xff] %v3639_v44 }
 0x1c9   : > { %1413 = vst [vmem:[#allocation2 + $0x38] sm:$0xff] %v3641_v17 }
 0x1ca   : > { %1414 = vst [vmem:[#allocation2 + $0x60] sm:$0xff] %v3657_v2 }
 0x1cb   : > { %1415 = vst [vmem:[#allocation2 + $0x70] sm:$0xff] %v3659_v32 }
 0x1cc   : > { %1416 = vst [vmem:[#allocation2 + $0x78] sm:$0xff] %v3665_v62 }
 0x1cd   : > { %1417 = vst [vmem:[#allocation2 + $0x28] sm:$0xff] %v3667_v41 }
 0x1ce PF: > { %p2588_p2 = scmp.le.s32.totalorder %s2947_s16, 0 }
 0x1d0   : > { %1421 = sbr.rel (%p2588_p2) target bundleno = 488 (0x1e8), region = 60 }
 0x1d5   : > { %v1422_v8 = vld [vmem:[#allocation2 + $0x30] sm:$0xff]  ;;  %v1423_v10 = vld [vmem:[#allocation2] sm:$0xff]  ;;  %v1424_v1 = vld [vmem:[#allocation2 + $0x58] sm:$0xff] }
 0x1d6   : > { %v1438_v51 = vadd.f32 %v1422_v8, %v3589_v55  ;;  %v1439_v45 = vadd.f32 %v1423_v10, %v3591_v56  ;;  %v1440_v60 = vadd.f32 %v1424_v1, %v3599_v15  ;;  %v1425_v16 = vld [vmem:[#allocation2 + $0x18] sm:$0xff]  ;;  %v1426_v35 = vld [vmem:[#allocation2 + $0x50] sm:$0xff]  ;;  %v1427_v36 = vld [vmem:[#allocation2 + $0x68] sm:$0xff] }
 0x1d7   : > { %v1441_v37 = vadd.f32 %v1425_v16, %v3601_v57  ;;  %v1428_v38 = vld [vmem:[#allocation2 + $0x8] sm:$0xff]  ;;  %v1442_v43 = vadd.f32 %v1426_v35, %v3609_v39  ;;  %v1443_v3 = vadd.f32 %v1427_v36, %v3611_v20  ;;  %v1430_v50 = vld [vmem:[#allocation2 + $0x40] sm:$0xff]  ;;  %v1432_v6 = vld [vmem:[#allocation2 + $0x10] sm:$0xff] }
 0x1d8   : > { %1454 = vst [vmem:[#allocation2 + $0x30] sm:$0xff] %v1438_v51  ;;  %v1429_v12 = vld [vmem:[#allocation2 + $0x48] sm:$0xff]  ;;  %v1444_v55 = vadd.f32 %v1428_v38, %v3619_v48  ;;  %v1431_v56 = vld [vmem:[#allocation2 + $0x20] sm:$0xff]  ;;  %v1446_v57 = vadd.f32 %v1430_v50, %v3629_v26  ;;  %v1433_v4 = vld [vmem:[#allocation2 + $0x38] sm:$0xff]  ;;  %v1448_v20 = vadd.f32 %v1432_v6, %v3639_v44 }
 0x1d9   : > { %1455 = vst [vmem:[#allocation2] sm:$0xff] %v1439_v45  ;;  %v1445_v15 = vadd.f32 %v1429_v12, %v3621_v61  ;;  %v1447_v39 = vadd.f32 %v1431_v56, %v3631_v63  ;;  %v1434_v18 = vld [vmem:[#allocation2 + $0x60] sm:$0xff]  ;;  %v1435_v13 = vld [vmem:[#allocation2 + $0x70] sm:$0xff]  ;;  %v1449_v48 = vadd.f32 %v1433_v4, %v3641_v17  ;;  %v1436_v24 = vld [vmem:[#allocation2 + $0x78] sm:$0xff] }
 0x1da   : > { %1456 = vst [vmem:[#allocation2 + $0x58] sm:$0xff] %v1440_v60  ;;  %v1450_v61 = vadd.f32 %v1434_v18, %v3657_v2  ;;  %v1437_v52 = vld [vmem:[#allocation2 + $0x28] sm:$0xff]  ;;  %v1451_v26 = vadd.f32 %v1435_v13, %v3659_v32  ;;  %v1452_v53 = vadd.f32 %v1436_v24, %v3665_v62 }
 0x1db   : > { %1457 = vst [vmem:[#allocation2 + $0x18] sm:$0xff] %v1441_v37  ;;  %v1453_v63 = vadd.f32 %v1437_v52, %v3667_v41 }
 0x1dc   : > { %1458 = vst [vmem:[#allocation2 + $0x50] sm:$0xff] %v1442_v43 }
 0x1dd   : > { %1459 = vst [vmem:[#allocation2 + $0x68] sm:$0xff] %v1443_v3 }
 0x1de   : > { %1460 = vst [vmem:[#allocation2 + $0x8] sm:$0xff] %v1444_v55 }
 0x1df   : > { %1461 = vst [vmem:[#allocation2 + $0x48] sm:$0xff] %v1445_v15 }
 0x1e0   : > { %1462 = vst [vmem:[#allocation2 + $0x40] sm:$0xff] %v1446_v57 }
 0x1e1   : > { %1463 = vst [vmem:[#allocation2 + $0x20] sm:$0xff] %v1447_v39 }
 0x1e2   : > { %1464 = vst [vmem:[#allocation2 + $0x10] sm:$0xff] %v1448_v20 }
 0x1e3   : > { %1465 = vst [vmem:[#allocation2 + $0x38] sm:$0xff] %v1449_v48 }
 0x1e4   : > { %1466 = vst [vmem:[#allocation2 + $0x60] sm:$0xff] %v1450_v61 }
 0x1e5   : > { %1467 = vst [vmem:[#allocation2 + $0x70] sm:$0xff] %v1451_v26 }
 0x1e6   : > { %1468 = vst [vmem:[#allocation2 + $0x78] sm:$0xff] %v1452_v53 }
 0x1e7   : > { %1469 = vst [vmem:[#allocation2 + $0x28] sm:$0xff] %v1453_v63 }
 0x1e8 PF: > { %p2589_p4 = scmp.ne.s32.totalorder %s2947_s16, 1 }
 0x1e9   : > { %s2968_s27 = smov (!%p2589_p4), 1   ;;  %s2969_s28 = smov (!%p2589_p4), 127  }
 0x1ea   : > { %1473 = sbr.rel (%p2589_p4) target bundleno = 1220 (0x4c4), region = 64  ;;  %s4411_s5 = sld [smem:[#allocation20_spill]] (!%p2589_p4) }
 0x1eb   : > { %s4412_s4 = sld [smem:[#allocation19_spill]] (!%p2589_p4) }
 0x1ec   : > { %s4413_s6 = sld [smem:[#allocation21_spill]] (!%p2589_p4) }
 0x1ef   : > { %v1506_v44 = vlaneseq  ;;  %v1486_v17 = vld [vmem:[#allocation2 + $0x60] sm:$0xff]  ;;  %v1488_v21 = vld [vmem:[#allocation2 + $0x78] sm:$0xff]  ;;  %v1489_v11 = vld [vmem:[#allocation2 + $0x28] sm:$0xff]  ;;  %v2970_v60 = vmov 0  }
 0x1f0   : > { %v3718_v58 = vmul.f32 0.0625, %v1486_v17  ;;  %v3732_v27 = vmul.f32 0.0625, %v1488_v21  ;;  %v1487_v34 = vld [vmem:[#allocation2 + $0x70] sm:$0xff]  ;;  %v3740_v49 = vmul.f32 0.0625, %v1489_v11  ;;  %v1482_v2 = vld [vmem:[#allocation2 + $0x40] sm:$0xff]  ;;  %v1485_v28 = vld [vmem:[#allocation2 + $0x38] sm:$0xff]  ;;  %2753 = vset.pattern.permute.xlu1 %v2970_v60  ;;  %2754 = vset.pattern.permute.xlu2 %v2970_v60 }
 0x1f1   : > { %v3716_v54 = vand.u32 127, %v1506_v44  ;;  %v3742_v31 = vmul.f32 0.0625, %v1487_v34  ;;  %v1484_v40 = vld [vmem:[#allocation2 + $0x10] sm:$0xff]  ;;  %v1483_v32 = vld [vmem:[#allocation2 + $0x20] sm:$0xff]  ;;  %v3758_v9 = vmul.f32 0.0625, %v1482_v2  ;;  %v3768_v25 = vmul.f32 0.0625, %v1485_v28  ;;  %2752 = vset.pattern.permute.xlu0 %v2970_v60 }
 0x1f2   : > { %1523 = vrot.lane.b32.xlu2 %v3718_v58, %s2968_s27  ;;  %v3756_v23 = vmul.f32 0.0625, %v1484_v40  ;;  %v3760_v0 = vmul.f32 0.0625, %v1483_v32  ;;  %v1478_v29 = vld [vmem:[#allocation2 + $0x50] sm:$0xff]  ;;  %v1480_v7 = vld [vmem:[#allocation2 + $0x8] sm:$0xff]  ;;  %v1476_v62 = vld [vmem:[#allocation2 + $0x58] sm:$0xff] }
 0x1f3   : > { %v3721_v19 = vcvt.s32.f32 %v3716_v54  ;;  %v1508_v59 = vadd.s32 128, %v3716_v54  ;;  %v3776_v46 = vmul.f32 0.0625, %v1478_v29  ;;  %v1479_v14 = vld [vmem:[#allocation2 + $0x68] sm:$0xff]  ;;  %v3784_v22 = vmul.f32 0.0625, %v1480_v7  ;;  %v1474_v47 = vld [vmem:[#allocation2 + $0x30] sm:$0xff]  ;;  %v1475_v10 = vld [vmem:[#allocation2] sm:$0xff] }
 0x1f4   : > { %v1481_v33 = vld [vmem:[#allocation2 + $0x48] sm:$0xff]  ;;  %v3786_v42 = vmul.f32 0.0625, %v1479_v14  ;;  %v3802_v41 = vmul.f32 0.0625, %v1474_v47  ;;  %v3804_v8 = vmul.f32 0.0625, %v1476_v62  ;;  %v1477_v1 = vld [vmem:[#allocation2 + $0x18] sm:$0xff]  ;;  %v3812_v51 = vmul.f32 0.0625, %v1475_v10 }
 0x1f5   : > { %1615 = vrot.lane.b32.xlu1 %v3721_v19, %s2969_s28  ;;  %1560 = vrot.lane.b32.xlu0 %v3721_v19, %s2968_s27  ;;  %v3730_v5 = vcvt.s32.f32 %v1508_v59  ;;  %v3788_v30 = vmul.f32 0.0625, %v1481_v33  ;;  %v3814_v45 = vmul.f32 0.0625, %v1477_v1  ;;  %vm1543_vm3 = vcmp.lt.s32.totalorder %v3716_v54, 1  ;;  %v1831_v11 = vld [vmem:[%s4411_s5 + $0x30] sm:$0xff] }
 0x1f6   : > { %vm1598_vm4 = vcmp.lt.s32.totalorder %v3716_v54, 127 }
 0x1fa   : > { %1525 = vrot.lane.b32.xlu2 %v3732_v27, %s2968_s27 }
 0x1fd   : > { %1617 = vrot.lane.b32.xlu1 %v3730_v5, %s2969_s28  ;;  %1562 = vrot.lane.b32.xlu0 %v3730_v5, %s2968_s27 }
 0x202   : > { %1578 = vrot.lane.b32.xlu2 %v3718_v58, %s2969_s28 }
 0x205   : > { %1541 = vrot.lane.b32.xlu1 %v3740_v49, %s2968_s27  ;;  %1539 = vrot.lane.b32.xlu0 %v3742_v31, %s2968_s27 }
 0x20a   : > { %1596 = vrot.lane.b32.xlu2 %v3740_v49, %s2969_s28 }
 0x20d   : > { %1594 = vrot.lane.b32.xlu1 %v3742_v31, %s2969_s28  ;;  %1580 = vrot.lane.b32.xlu0 %v3732_v27, %s2969_s28 }
 0x212   : > { %1535 = vrot.lane.b32.xlu2 %v3760_v0, %s2968_s27 }
 0x215   : > { %1521 = vrot.lane.b32.xlu1 %v3756_v23, %s2968_s27  ;;  %1519 = vrot.lane.b32.xlu0 %v3758_v9, %s2968_s27 }
 0x21a   : > { %1576 = vrot.lane.b32.xlu2 %v3756_v23, %s2969_s28 }
 0x21d   : > { %1574 = vrot.lane.b32.xlu1 %v3758_v9, %s2969_s28  ;;  %1537 = vrot.lane.b32.xlu0 %v3768_v25, %s2968_s27 }
 0x222   : > { %1515 = vrot.lane.b32.xlu2 %v3776_v46, %s2968_s27 }
 0x225   : > { %1592 = vrot.lane.b32.xlu1 %v3768_v25, %s2969_s28  ;;  %1590 = vrot.lane.b32.xlu0 %v3760_v0, %s2969_s28 }
 0x22a   : > { %1533 = vrot.lane.b32.xlu2 %v3788_v30, %s2968_s27 }
 0x22d   : > { %1517 = vrot.lane.b32.xlu0 %v3784_v22, %s2968_s27  ;;  %1531 = vrot.lane.b32.xlu1 %v3786_v42, %s2968_s27 }
 0x232   : > { %1586 = vrot.lane.b32.xlu2 %v3786_v42, %s2969_s28 }
 0x235   : > { %1572 = vrot.lane.b32.xlu1 %v3784_v22, %s2969_s28  ;;  %1570 = vrot.lane.b32.xlu0 %v3776_v46, %s2969_s28 }
 0x23a   : > { %1513 = vrot.lane.b32.xlu2 %v3804_v8, %s2968_s27 }
 0x23d   : > { %1588 = vrot.lane.b32.xlu0 %v3788_v30, %s2969_s28  ;;  %1511 = vrot.lane.b32.xlu1 %v3802_v41, %s2968_s27 }
 0x242   : > { %1566 = vrot.lane.b32.xlu2 %v3802_v41, %s2969_s28 }
 0x245   : > { %1527 = vrot.lane.b32.xlu0 %v3812_v51, %s2968_s27  ;;  %1529 = vrot.lane.b32.xlu1 %v3814_v45, %s2968_s27 }
 0x24a   : > { %1584 = vrot.lane.b32.xlu2 %v3814_v45, %s2969_s28 }
 0x24c   : > { %v1524_v16 = vpop.permute.xlu2 %1523 }
 0x24d   : > { %1568 = vrot.lane.b32.xlu0 %v3804_v8, %s2969_s28  ;;  %1582 = vrot.lane.b32.xlu1 %v3812_v51, %s2969_s28 }
 0x254   : > { %v1526_v35 = vpop.permute.xlu2 %1525 }
 0x255   : > { %1865 = vperm.xlu0 %2752, %v1831_v11  }
 0x25c   : > { %v3828_v36 = vpop.permute.xlu2 %1578 }
 0x264   : > { %v1597_v43 = vpop.permute.xlu2 %1596 }
 0x267   : > { %v1616_v37 = vpop.permute.xlu1 %1615  ;;  %v1561_v38 = vpop.permute.xlu0 %1560 }
 0x26c   : > { %v3844_v13 = vpop.permute.xlu2 %1535 }
 0x26f   : > { %v1618_v12 = vpop.permute.xlu1 %1617  ;;  %v1563_v3 = vpop.permute.xlu0 %1562 }
 0x270   : > { %v1619_v50 = vsel %vm1598_vm4, %v1616_v37, %v1618_v12  ;;  %v1620_v55 = vsel %vm1598_vm4, %v1618_v12, %v1616_v37  ;;  %v1564_v56 = vsel %vm1543_vm3, %v1561_v38, %v1563_v3  ;;  %v1565_v15 = vsel %vm1543_vm3, %v1563_v3, %v1561_v38 }
 0x271   : > { %v1623_v6 = vsub.f32 %v1619_v50, %v3721_v19  ;;  %v1624_v57 = vsub.f32 %v1620_v55, %v3730_v5  ;;  %v1621_v4 = vsub.f32 %v1565_v15, %v3721_v19  ;;  %v1622_v39 = vsub.f32 %v1564_v56, %v3730_v5 }
 0x273   : > { %vm1631_vm5 = vcmp.eq.f32.partialorder %v1623_v6, 1.0  ;;  %vm1632_vm6 = vcmp.eq.f32.partialorder %v1624_v57, 1.0  ;;  %vm1633_vm7 = vcmp.eq.f32.partialorder %v1623_v6, -1.0  ;;  %vm1634_vm8 = vcmp.eq.f32.partialorder %v1624_v57, -1.0 }
 0x274   : > { %vm1635_vm9 = vmor %vm1631_vm5, %vm1633_vm7  ;;  %vm1625_vm10 = vcmp.eq.f32.partialorder %v1621_v4, 1.0  ;;  %vm1626_vm11 = vcmp.eq.f32.partialorder %v1622_v39, 1.0  ;;  %vm1627_vm12 = vcmp.eq.f32.partialorder %v1621_v4, -1.0  ;;  %vm1628_vm13 = vcmp.eq.f32.partialorder %v1622_v39, -1.0  ;;  %v1577_v50 = vpop.permute.xlu2 %1576 }
 0x275   : > { %vm1636_vm14 = vmor %vm1632_vm6, %vm1634_vm8  ;;  %v1659_v18 = vsel %vm1635_vm9, 1, %v2970_v60 }
 0x276   : > { %v1660_v20 = vsel %vm1636_vm14, 1, %v2970_v60  ;;  %vm1629_vm15 = vmor %vm1625_vm10, %vm1627_vm12  ;;  %v1661_v52 = vperm.slane %v1659_v18, 0 }
 0x277   : > { %vm1630_vm0 = vmor %vm1626_vm11, %vm1628_vm13  ;;  %v1637_v48 = vsel %vm1629_vm15, 1, %v2970_v60  ;;  %v1542_v24 = vpop.permute.xlu1 %1541  ;;  %v1540_v61 = vpop.permute.xlu0 %1539  ;;  %v1662_v63 = vperm.slane %v1660_v20, 0 }
 0x278   : > { %v1638_v26 = vsel %vm1630_vm0, 1, %v2970_v60  ;;  %v1639_v53 = vperm.slane %v1637_v48, 0  ;;  %v1551_v17 = vsel %vm1543_vm3, %v1526_v35, %v1542_v24  ;;  %v1559_v19 = vsel %vm1543_vm3, %v1542_v24, %v1526_v35 }
 0x279   : > { %v1640_v44 = vperm.slane %v1638_v26, 0  ;;  %v1550_v21 = vsel %vm1543_vm3, %v1524_v16, %v1540_v61  ;;  %v1558_v5 = vsel %vm1543_vm3, %v1540_v61, %v1524_v16  ;;  %vm3866_vm5 = vcmp.eq.s32.totalorder %v1661_v52, 1 }
 0x27a   : > { %vm3850_vm1 = vcmp.eq.s32.totalorder %v1639_v53, 1  ;;  %vm3870_vm6 = vcmp.eq.s32.totalorder %v1662_v63, 1 }
 0x27b   : > { %vm3858_vm2 = vcmp.eq.s32.totalorder %v1640_v44, 1  ;;  %v1727_v34 = vsel %vm3850_vm1, %v1559_v19, 0.0  ;;  %v1725_v28 = vsel %vm3850_vm1, %v1558_v5, 0.0  ;;  %v1657_v7 = vsel %vm3850_vm1, %v1559_v19, -inf }
 0x27c   : > { %v1728_v40 = vsel %vm3858_vm2, %v1551_v17, 0.0  ;;  %v1726_v29 = vsel %vm3858_vm2, %v1550_v21, 0.0  ;;  %v1658_v14 = vsel %vm3858_vm2, %v1551_v17, -inf  ;;  %v1743_v33 = vadd.f32 %v1727_v34, %v3732_v27 }
 0x27d   : > { %v1655_v47 = vsel %vm3850_vm1, %v1558_v5, -inf  ;;  %v1744_v62 = vadd.f32 %v1728_v40, %v3740_v49  ;;  %v1656_v10 = vsel %vm3858_vm2, %v1550_v21, -inf  ;;  %v1741_v1 = vadd.f32 %v1725_v28, %v3718_v58 }
 0x27e   : > { %v1742_v60 = vadd.f32 %v1726_v29, %v3742_v31 }
 0x27f   : > { %v1595_v16 = vpop.permute.xlu1 %1594  ;;  %v1581_v35 = vpop.permute.xlu0 %1580 }
 0x280   : > { %v1605_v37 = vsel %vm1598_vm4, %v3828_v36, %v1595_v16  ;;  %v1613_v38 = vsel %vm1598_vm4, %v1595_v16, %v3828_v36  ;;  %v1606_v12 = vsel %vm1598_vm4, %v1581_v35, %v1597_v43  ;;  %v1614_v3 = vsel %vm1598_vm4, %v1597_v43, %v1581_v35 }
 0x281   : > { %v1677_v55 = vsel %vm3866_vm5, %v1605_v37, -inf  ;;  %v1678_v56 = vsel %vm3870_vm6, %v1613_v38, -inf  ;;  %v1757_v15 = vsel %vm3866_vm5, %v1605_v37, 0.0  ;;  %v1758_v6 = vsel %vm3870_vm6, %v1613_v38, 0.0 }
 0x282   : > { %v1693_v36 = vmax.f32 %v1655_v47, %v1677_v55  ;;  %v1694_v57 = vmax.f32 %v1656_v10, %v1678_v56  ;;  %v1773_v4 = vadd.f32 %v1757_v15, %v1741_v1  ;;  %v1774_v39 = vadd.f32 %v1758_v6, %v1742_v60  ;;  %v3920_v10 = vpop.permute.xlu2 %1515 }
 0x283   : > { %v1679_v43 = vsel %vm3866_vm5, %v1606_v12, -inf  ;;  %v1680_v18 = vsel %vm3870_vm6, %v1614_v3, -inf  ;;  %v1759_v20 = vsel %vm3866_vm5, %v1606_v12, 0.0  ;;  %v1760_v48 = vsel %vm3870_vm6, %v1614_v3, 0.0 }
 0x284   : > { %v1695_v24 = vmax.f32 %v1657_v7, %v1679_v43  ;;  %v1696_v61 = vmax.f32 %v1658_v14, %v1680_v18  ;;  %v1775_v52 = vadd.f32 %v1759_v20, %v1743_v33  ;;  %v1776_v26 = vadd.f32 %v1760_v48, %v1744_v62 }
 0x285   : > { %v1709_v53 = vmax.f32 %v1693_v36, %v3718_v58  ;;  %v1789_v63 = vmul.f32 0.33333334, %v1773_v4  ;;  %v1710_v44 = vmax.f32 %v1694_v57, %v3742_v31  ;;  %v1790_v17 = vmul.f32 0.33333334, %v1774_v39 }
 0x286   : > { %v1711_v19 = vmax.f32 %v1695_v24, %v3732_v27  ;;  %v1791_v21 = vmul.f32 0.33333334, %v1775_v52  ;;  %v1712_v5 = vmax.f32 %v1696_v61, %v3740_v49  ;;  %v1792_v34 = vmul.f32 0.33333334, %v1776_v26 }
 0x287   : > { %v1522_v40 = vpop.permute.xlu1 %1521  ;;  %v1520_v28 = vpop.permute.xlu0 %1519  ;;  %v1805_v29 = vadd.f32 %v1789_v63, %v1709_v53  ;;  %v1806_v47 = vadd.f32 %v1790_v17, %v1710_v44 }
 0x288   : > { %v1807_v7 = vadd.f32 %v1791_v21, %v1711_v19  ;;  %v1808_v14 = vadd.f32 %v1792_v34, %v1712_v5  ;;  %v1548_v27 = vsel %vm1543_vm3, %v1520_v28, %v3844_v13  ;;  %v1556_v49 = vsel %vm1543_vm3, %v3844_v13, %v1520_v28 }
 0x289   : > { %v1721_v16 = vsel %vm3850_vm1, %v1556_v49, 0.0  ;;  %v1722_v35 = vsel %vm3858_vm2, %v1548_v27, 0.0  ;;  %v1651_v13 = vsel %vm3850_vm1, %v1556_v49, -inf  ;;  %v1652_v3 = vsel %vm3858_vm2, %v1548_v27, -inf }
 0x28a   : > { %v1815_v33 = vpack.c.bf16 %v1807_v7, %v1805_v29  ;;  %v1816_v62 = vpack.c.bf16 %v1808_v14, %v1806_v47  ;;  %v1534_v12 = vpop.permute.xlu2 %1533  ;;  %v1737_v55 = vadd.f32 %v1721_v16, %v3758_v9  ;;  %v1738_v56 = vadd.f32 %v1722_v35, %v3760_v0 }
 0x28c   : > { %1910 = vmatpush.bf16.msra.mxu0 %v1815_v33  ;;  %1939 = vmatpush.bf16.msra.mxu1 %v1816_v62 }
 0x28f   : > { %v1575_v58 = vpop.permute.xlu1 %1574  ;;  %v1538_v31 = vpop.permute.xlu0 %1537 }
 0x290   : > { %v1549_v1 = vsel %vm1543_vm3, %v1522_v40, %v1538_v31  ;;  %v1557_v60 = vsel %vm1543_vm3, %v1538_v31, %v1522_v40 }
 0x291   : > { %v1723_v37 = vsel %vm3850_vm1, %v1557_v60, 0.0  ;;  %v1724_v38 = vsel %vm3858_vm2, %v1549_v1, 0.0  ;;  %v1653_v15 = vsel %vm3850_vm1, %v1557_v60, -inf  ;;  %v1654_v6 = vsel %vm3858_vm2, %v1549_v1, -inf }
 0x292   : > { %v1739_v36 = vadd.f32 %v1723_v37, %v3756_v23  ;;  %v1740_v57 = vadd.f32 %v1724_v38, %v3768_v25  ;;  %v1587_v62 = vpop.permute.xlu2 %1586 }
 0x297   : > { %v1593_v4 = vpop.permute.xlu1 %1592  ;;  %v1591_v39 = vpop.permute.xlu0 %1590 }
 0x298   : > { %v1604_v43 = vsel %vm1598_vm4, %v1577_v50, %v1593_v4  ;;  %v1612_v18 = vsel %vm1598_vm4, %v1593_v4, %v1577_v50  ;;  %v1603_v20 = vsel %vm1598_vm4, %v1575_v58, %v1591_v39  ;;  %v1611_v48 = vsel %vm1598_vm4, %v1591_v39, %v1575_v58 }
 0x299   : > { %v1675_v24 = vsel %vm3866_vm5, %v1604_v43, -inf  ;;  %v1676_v61 = vsel %vm3870_vm6, %v1612_v18, -inf  ;;  %v1755_v52 = vsel %vm3866_vm5, %v1604_v43, 0.0  ;;  %v1756_v26 = vsel %vm3870_vm6, %v1612_v18, 0.0 }
 0x29a   : > { %v1691_v53 = vmax.f32 %v1653_v15, %v1675_v24  ;;  %v1692_v50 = vmax.f32 %v1654_v6, %v1676_v61  ;;  %v1771_v63 = vadd.f32 %v1755_v52, %v1739_v36  ;;  %v1772_v44 = vadd.f32 %v1756_v26, %v1740_v57  ;;  %v1514_v57 = vpop.permute.xlu2 %1513 }
 0x29b   : > { %v1673_v17 = vsel %vm3866_vm5, %v1603_v20, -inf  ;;  %v1674_v19 = vsel %vm3870_vm6, %v1611_v48, -inf  ;;  %v1753_v21 = vsel %vm3866_vm5, %v1603_v20, 0.0  ;;  %v1754_v5 = vsel %vm3870_vm6, %v1611_v48, 0.0 }
 0x29c   : > { %v1787_v34 = vmul.f32 0.33333334, %v1771_v63  ;;  %v1788_v40 = vmul.f32 0.33333334, %v1772_v44  ;;  %v1689_v28 = vmax.f32 %v1651_v13, %v1673_v17  ;;  %v1690_v29 = vmax.f32 %v1652_v3, %v1674_v19 }
 0x29d   : > { %v1769_v47 = vadd.f32 %v1753_v21, %v1737_v55  ;;  %v1770_v7 = vadd.f32 %v1754_v5, %v1738_v56  ;;  %v1707_v14 = vmax.f32 %v1691_v53, %v3756_v23  ;;  %v1708_v33 = vmax.f32 %v1692_v50, %v3768_v25  ;;  %v1832_v25 = vld [vmem:[%s4411_s5 + $0x38] sm:$0xff] }
 0x29e   : > { %v1705_v1 = vmax.f32 %v1689_v28, %v3758_v9  ;;  %v1706_v60 = vmax.f32 %v1690_v29, %v3760_v0  ;;  %1870 = vperm.xlu1 %2753, %v1832_v25  }
 0x29f   : > { %v1785_v58 = vmul.f32 0.33333334, %v1769_v47  ;;  %v1786_v31 = vmul.f32 0.33333334, %v1770_v7  ;;  %v1518_v27 = vpop.permute.xlu0 %1517  ;;  %v1532_v49 = vpop.permute.xlu1 %1531  ;;  %v1803_v16 = vadd.f32 %v1787_v34, %v1707_v14  ;;  %v1804_v35 = vadd.f32 %v1788_v40, %v1708_v33  ;;  %v1830_v47 = vld [vmem:[%s4411_s5 + $0x28] sm:$0xff] }
 0x2a0   : > { %v1546_v9 = vsel %vm1543_vm3, %v3920_v10, %v1532_v49  ;;  %v1554_v0 = vsel %vm1543_vm3, %v1532_v49, %v3920_v10  ;;  %v1547_v56 = vsel %vm1543_vm3, %v1518_v27, %v1534_v12  ;;  %v1555_v15 = vsel %vm1543_vm3, %v1534_v12, %v1518_v27 }
 0x2a1   : > { %v1801_v37 = vadd.f32 %v1785_v58, %v1705_v1  ;;  %v1802_v38 = vadd.f32 %v1786_v31, %v1706_v60  ;;  %v1717_v4 = vsel %vm3850_vm1, %v1554_v0, 0.0  ;;  %v1718_v10 = vsel %vm3858_vm2, %v1546_v9, 0.0 }
 0x2a2   : > { %v1719_v39 = vsel %vm3850_vm1, %v1555_v15, 0.0  ;;  %v1720_v43 = vsel %vm3858_vm2, %v1547_v56, 0.0  ;;  %v1647_v20 = vsel %vm3850_vm1, %v1554_v0, -inf  ;;  %v1648_v48 = vsel %vm3858_vm2, %v1546_v9, -inf  ;;  %v1567_v1 = vpop.permute.xlu2 %1566 }
 0x2a3   : > { %v1813_v13 = vpack.c.bf16 %v1803_v16, %v1801_v37  ;;  %v1814_v3 = vpack.c.bf16 %v1804_v35, %v1802_v38  ;;  %v1733_v52 = vadd.f32 %v1717_v4, %v3776_v46  ;;  %v1734_v26 = vadd.f32 %v1718_v10, %v3786_v42 }
 0x2a4   : > { %v1649_v53 = vsel %vm3850_vm1, %v1555_v15, -inf  ;;  %v1650_v50 = vsel %vm3858_vm2, %v1547_v56, -inf  ;;  %v1735_v63 = vadd.f32 %v1719_v39, %v3784_v22  ;;  %v1736_v44 = vadd.f32 %v1720_v43, %v3788_v30 }
 0x2a5   : > { %1911 = vmatpush.bf16.msra.mxu0 %v1813_v13  ;;  %1940 = vmatpush.bf16.msra.mxu1 %v1814_v3 }
 0x2a6   : > { %1860 = vperm.xlu1 %2753, %v1830_v47  }
 0x2a7   : > { %v1573_v23 = vpop.permute.xlu1 %1572  ;;  %v1571_v55 = vpop.permute.xlu0 %1570 }
 0x2a8   : > { %v1601_v6 = vsel %vm1598_vm4, %v1571_v55, %v1587_v62  ;;  %v1609_v36 = vsel %vm1598_vm4, %v1587_v62, %v1571_v55  ;;  %v1825_v55 = vld [vmem:[%s4411_s5] sm:$0xff] }
 0x2a9   : > { %v1669_v12 = vsel %vm3866_vm5, %v1601_v6, -inf  ;;  %v1670_v18 = vsel %vm3870_vm6, %v1609_v36, -inf  ;;  %v1749_v24 = vsel %vm3866_vm5, %v1601_v6, 0.0  ;;  %v1750_v61 = vsel %vm3870_vm6, %v1609_v36, 0.0 }
 0x2aa   : > { %v1685_v17 = vmax.f32 %v1647_v20, %v1669_v12  ;;  %v1686_v19 = vmax.f32 %v1648_v48, %v1670_v18  ;;  %v1765_v34 = vadd.f32 %v1749_v24, %v1733_v52  ;;  %v1766_v40 = vadd.f32 %v1750_v61, %v1734_v26 }
 0x2ac   : > { %v1781_v38 = vmul.f32 0.33333334, %v1765_v34  ;;  %v1782_v13 = vmul.f32 0.33333334, %v1766_v40  ;;  %v1701_v3 = vmax.f32 %v1685_v17, %v3776_v46 }
 0x2ae   : > { %1835 = vperm.xlu1 %2753, %v1825_v55  }
 0x2af   : > { %v1589_v21 = vpop.permute.xlu0 %1588  ;;  %v1512_v5 = vpop.permute.xlu1 %1511 }
 0x2b0   : > { %v1602_v28 = vsel %vm1598_vm4, %v1573_v23, %v1589_v21  ;;  %v1610_v29 = vsel %vm1598_vm4, %v1589_v21, %v1573_v23  ;;  %v1702_v23 = vmax.f32 %v1686_v19, %v3786_v42  ;;  %v1797_v42 = vadd.f32 %v1781_v38, %v1701_v3  ;;  %v1829_v21 = vld [vmem:[%s4411_s5 + $0x20] sm:$0xff] }
 0x2b1   : > { %v1671_v7 = vsel %vm3866_vm5, %v1602_v28, -inf  ;;  %v1672_v14 = vsel %vm3870_vm6, %v1610_v29, -inf  ;;  %v1751_v33 = vsel %vm3866_vm5, %v1602_v28, 0.0  ;;  %v1752_v62 = vsel %vm3870_vm6, %v1610_v29, 0.0  ;;  %1855 = vperm.xlu2 %2754, %v1829_v21  }
 0x2b2   : > { %v1687_v58 = vmax.f32 %v1649_v53, %v1671_v7  ;;  %v1688_v31 = vmax.f32 %v1650_v50, %v1672_v14  ;;  %v1767_v27 = vadd.f32 %v1751_v33, %v1735_v63  ;;  %v1768_v49 = vadd.f32 %v1752_v62, %v1736_v44 }
 0x2b3   : > { %v1798_v6 = vadd.f32 %v1782_v13, %v1702_v23 }
 0x2b4   : > { %v1783_v60 = vmul.f32 0.33333334, %v1767_v27  ;;  %v1784_v16 = vmul.f32 0.33333334, %v1768_v49  ;;  %v1703_v35 = vmax.f32 %v1687_v58, %v3784_v22  ;;  %v1704_v37 = vmax.f32 %v1688_v31, %v3788_v30 }
 0x2b6   : > { %v1799_v0 = vadd.f32 %v1783_v60, %v1703_v35  ;;  %v1800_v56 = vadd.f32 %v1784_v16, %v1704_v37 }
 0x2b7   : > { %v1528_v25 = vpop.permute.xlu0 %1527  ;;  %v1530_v9 = vpop.permute.xlu1 %1529 }
 0x2b8   : > { %v1544_v15 = vsel %vm1543_vm3, %v1512_v5, %v1528_v25  ;;  %v1552_v22 = vsel %vm1543_vm3, %v1528_v25, %v1512_v5  ;;  %v1545_v30 = vsel %vm1543_vm3, %v1514_v57, %v1530_v9  ;;  %v1553_v46 = vsel %vm1543_vm3, %v1530_v9, %v1514_v57  ;;  %v1585_v57 = vpop.permute.xlu2 %1584 }
 0x2b9   : > { %v1713_v36 = vsel %vm3850_vm1, %v1552_v22, 0.0  ;;  %v1714_v4 = vsel %vm3858_vm2, %v1544_v15, 0.0  ;;  %v1811_v10 = vpack.c.bf16 %v1799_v0, %v1797_v42  ;;  %v1812_v39 = vpack.c.bf16 %v1800_v56, %v1798_v6  ;;  %v2649_v56 = vld [vmem:[%s4412_s4] sm:$0xff]  ;;  %v2013_v42 = vld [vmem:[%s4373_s7 + $0x18] sm:$0xff]  ;;  %v2015_v6 = vld [vmem:[%s4373_s7 + $0x28] sm:$0xff] }
 0x2ba   : > { %v1715_v43 = vsel %vm3850_vm1, %v1553_v46, 0.0  ;;  %v1716_v12 = vsel %vm3858_vm2, %v1545_v30, 0.0  ;;  %v1643_v18 = vsel %vm3850_vm1, %v1552_v22, -inf  ;;  %v1644_v20 = vsel %vm3858_vm2, %v1544_v15, -inf  ;;  %v2011_v15 = vld [vmem:[%s4373_s7 + $0x8] sm:$0xff]  ;;  %v2010_v22 = vld [vmem:[%s4373_s7] sm:$0xff] }
 0x2bb   : > { %1912 = vmatpush.bf16.msra.mxu0 %v1811_v10  ;;  %1941 = vmatpush.bf16.msra.mxu1 %v1812_v39  ;;  %v1729_v48 = vadd.f32 %v1713_v36, %v3802_v41  ;;  %v1730_v24 = vadd.f32 %v1714_v4, %v3812_v51  ;;  %v1645_v61 = vsel %vm3850_vm1, %v1553_v46, -inf  ;;  %v1646_v52 = vsel %vm3858_vm2, %v1545_v30, -inf  ;;  %v2012_v30 = vld [vmem:[%s4373_s7 + $0x10] sm:$0xff]  ;;  %v2014_v46 = vld [vmem:[%s4373_s7 + $0x20] sm:$0xff]  ;;  %v2652_v4 = vld [vmem:[%s4412_s4 + $0x18] sm:$0xff] }
 0x2bc   : > { %v1731_v26 = vadd.f32 %v1715_v43, %v3804_v8  ;;  %v1732_v53 = vadd.f32 %v1716_v12, %v3814_v45  ;;  %vm1893_vm3 = vcmask 523264   ;;  %2023 = vperm.xlu1 %2753, %v2011_v15   ;;  %v2651_v36 = vld [vmem:[%s4412_s4 + $0x10] sm:$0xff] }
 0x2bf   : > { %v1569_v50 = vpop.permute.xlu0 %1568  ;;  %v1583_v63 = vpop.permute.xlu1 %1582 }
 0x2c0   : > { %v1600_v44 = vsel %vm1598_vm4, %v1569_v50, %v1585_v57  ;;  %v1608_v17 = vsel %vm1598_vm4, %v1585_v57, %v1569_v50  ;;  %v1599_v19 = vsel %vm1598_vm4, %v1567_v1, %v1583_v63  ;;  %v1607_v59 = vsel %vm1598_vm4, %v1583_v63, %v1567_v1 }
 0x2c1   : > { %v1667_v5 = vsel %vm3866_vm5, %v1600_v44, -inf  ;;  %v1668_v34 = vsel %vm3870_vm6, %v1608_v17, -inf  ;;  %v1747_v40 = vsel %vm3866_vm5, %v1600_v44, 0.0  ;;  %v1748_v54 = vsel %vm3870_vm6, %v1608_v17, 0.0 }
 0x2c2   : > { %v1683_v28 = vmax.f32 %v1645_v61, %v1667_v5  ;;  %v1684_v29 = vmax.f32 %v1646_v52, %v1668_v34  ;;  %v1763_v47 = vadd.f32 %v1747_v40, %v1731_v26  ;;  %v1764_v7 = vadd.f32 %v1748_v54, %v1732_v53 }
 0x2c3   : > { %v1665_v14 = vsel %vm3866_vm5, %v1599_v19, -inf  ;;  %v1666_v33 = vsel %vm3870_vm6, %v1607_v59, -inf  ;;  %v1745_v62 = vsel %vm3866_vm5, %v1599_v19, 0.0  ;;  %v1746_v58 = vsel %vm3870_vm6, %v1607_v59, 0.0 }
 0x2c4   : > { %v1779_v31 = vmul.f32 0.33333334, %v1763_v47  ;;  %v1780_v27 = vmul.f32 0.33333334, %v1764_v7  ;;  %v1681_v49 = vmax.f32 %v1643_v18, %v1665_v14  ;;  %v1682_v1 = vmax.f32 %v1644_v20, %v1666_v33  ;;  %2038 = vperm.xlu1 %2753, %v2014_v46  }
 0x2c5   : > { %v1761_v60 = vadd.f32 %v1745_v62, %v1729_v48  ;;  %v1762_v16 = vadd.f32 %v1746_v58, %v1730_v24  ;;  %v1699_v35 = vmax.f32 %v1683_v28, %v3804_v8  ;;  %v1700_v37 = vmax.f32 %v1684_v29, %v3814_v45  ;;  %v1827_v8 = vld [vmem:[%s4411_s5 + $0x10] sm:$0xff]  ;;  %v2650_v45 = vld [vmem:[%s4412_s4 + $0x8] sm:$0xff] }
 0x2c6   : > { %v1697_v38 = vmax.f32 %v1681_v49, %v3802_v41  ;;  %v1698_v13 = vmax.f32 %v1682_v1, %v3812_v51  ;;  %v1828_v41 = vld [vmem:[%s4411_s5 + $0x18] sm:$0xff]  ;;  %1845 = vperm.xlu2 %2754, %v1827_v8   ;;  %v1826_v51 = vld [vmem:[%s4411_s5 + $0x8] sm:$0xff] }
 0x2c7   : > { %v1777_v3 = vmul.f32 0.33333334, %v1761_v60  ;;  %v1778_v2 = vmul.f32 0.33333334, %v1762_v16  ;;  %v1795_v23 = vadd.f32 %v1779_v31, %v1699_v35  ;;  %v1796_v55 = vadd.f32 %v1780_v27, %v1700_v37  ;;  %1850 = vperm.xlu0 %2752, %v1828_v41   ;;  %v1866_v59 = vpop.permute.xlu0 %1865 }
 0x2c9   : > { %v1793_v32 = vadd.f32 %v1777_v3, %v1697_v38  ;;  %v1794_v25 = vadd.f32 %v1778_v2, %v1698_v13 }
 0x2cb   : > { %v1809_v9 = vpack.c.bf16 %v1795_v23, %v1793_v32  ;;  %v1810_v0 = vpack.c.bf16 %v1796_v55, %v1794_v25 }
 0x2cd   : > { %1913 = vmatpush.bf16.msra.mxu0 %v1809_v9  ;;  %1942 = vmatpush.bf16.msra.mxu1 %v1810_v0 }
 0x2ce   : > { %1840 = vperm.xlu2 %2754, %v1826_v51  }
 0x2cf   : > { %2018 = vperm.xlu0 %2752, %v2010_v22  }
 0x2d0   : > { %2606 = vmatmul.msk.bf16.vlgmr.msra.gmra.mxu0 %vm1893_vm3, %v2649_v56  ;;  %2610 = vmatmul.msk.bf16.vlgmr.msra.gmra.mxu1 %vm1893_vm3, %v2649_v56 }
 0x2d6   : > { %2028 = vperm.xlu2 %2754, %v2012_v30  }
 0x2d7   : > { %2033 = vperm.xlu0 %2752, %v2013_v42  }
 0x2de   : > { %2043 = vperm.xlu2 %2754, %v2015_v6  }
 0x2e0   : > { %2607 = vmatmul.msk.bf16.gmra.mxu0 %vm1893_vm3, %v2650_v45  ;;  %2611 = vmatmul.msk.bf16.gmra.mxu1 %vm1893_vm3, %v2650_v45 }
 0x2f0   : > { %2608 = vmatmul.msk.bf16.gmra.mxu0 %vm1893_vm3, %v2651_v36  ;;  %2612 = vmatmul.msk.bf16.gmra.mxu1 %vm1893_vm3, %v2651_v36 }
 0x300   : > { %2609 = vmatmul.msk.bf16.gmra.mxu0 %vm1893_vm3, %v2652_v4  ;;  %2613 = vmatmul.msk.bf16.gmra.mxu1 %vm1893_vm3, %v2652_v4 }
 0x30b   : > { %v1856_v39 = vpop.permute.xlu2 %1855 }
 0x310   : > { %v4156_v10 = vpop.permute.xlu1 %1870 }
 0x318   : > { %v1861_v43 = vpop.permute.xlu1 %1860 }
 0x320   : > { %v1846_v12 = vpop.permute.xlu2 %1845  ;;  %v1836_v57 = vpop.permute.xlu1 %1835 }
 0x328   : > { %v1841_v26 = vpop.permute.xlu2 %1840 }
 0x339   : > { %v1851_v28 = vpop.permute.xlu0 %1850 }
 0x34d   : > { %v1915_v18 = vpop.f32.mrf.mxu0  ;;  %v1944_v20 = vpop.f32.mrf.mxu1 }
 0x34e   : > { %v4158_v48 = vadd.f32 %v1915_v18, %v1836_v57  ;;  %v4160_v24 = vadd.f32 %v1944_v20, %v1836_v57 }
 0x350   : > { %v1964_v61 = vmax.f32 %v4158_v48, 0.0  ;;  %v1965_v52 = vmax.f32 %v4160_v24, 0.0  ;;  %v2024_v24 = vpop.permute.xlu1 %2023 }
 0x352   : > { %1980 = vst [vmem:[%s3671_s24] sm:$0xff] %v1964_v61 }
 0x353   : > { %1981 = vst [vmem:[%s3671_s24 + $0x8] sm:$0xff] %v1965_v52 }
 0x355   : > { %v1917_v53 = vpop.f32.mrf.mxu0  ;;  %v1946_v50 = vpop.f32.mrf.mxu1 }
 0x356   : > { %v4170_v63 = vadd.f32 %v1917_v53, %v1841_v26  ;;  %v4172_v44 = vadd.f32 %v1946_v50, %v1841_v26 }
 0x358   : > { %v1966_v17 = vmax.f32 %v4170_v63, 0.0  ;;  %v1967_v19 = vmax.f32 %v4172_v44, 0.0 }
 0x35a   : > { %1982 = vst [vmem:[%s3671_s24 + $0x10] sm:$0xff] %v1966_v17  ;;  %v2002_v36 = vpack.c.bf16 %v1966_v17, %v1964_v61  ;;  %v2003_v4 = vpack.c.bf16 %v1967_v19, %v1965_v52 }
 0x35b   : > { %1983 = vst [vmem:[%s3671_s24 + $0x18] sm:$0xff] %v1967_v19  ;;  %v2029_v19 = vpop.permute.xlu2 %2028 }
 0x35d   : > { %v1920_v11 = vpop.f32.mrf.mxu0  ;;  %v1949_v21 = vpop.f32.mrf.mxu1 }
 0x35e   : > { %v1921_v5 = vadd.f32 %v1920_v11, %v1846_v12  ;;  %v1950_v34 = vadd.f32 %v1949_v21, %v1846_v12  ;;  %v2019_v12 = vpop.permute.xlu0 %2018 }
 0x360   : > { %v1968_v40 = vmax.f32 %v1921_v5, 0.0  ;;  %v1969_v54 = vmax.f32 %v1950_v34, 0.0 }
 0x362   : > { %1984 = vst [vmem:[%s3671_s24 + $0x20] sm:$0xff] %v1968_v40 }
 0x363   : > { %1985 = vst [vmem:[%s3671_s24 + $0x28] sm:$0xff] %v1969_v54 }
 0x365   : > { %v1922_v29 = vpop.f32.mrf.mxu0  ;;  %v1951_v47 = vpop.f32.mrf.mxu1 }
 0x366   : > { %v1923_v7 = vadd.f32 %v1922_v29, %v1851_v28  ;;  %v1952_v14 = vadd.f32 %v1951_v47, %v1851_v28 }
 0x368   : > { %v1970_v33 = vmax.f32 %v1923_v7, 0.0  ;;  %v1971_v62 = vmax.f32 %v1952_v14, 0.0  ;;  %v2034_v14 = vpop.permute.xlu0 %2033 }
 0x36a   : > { %1986 = vst [vmem:[%s3671_s24 + $0x30] sm:$0xff] %v1970_v33  ;;  %v2004_v42 = vpack.c.bf16 %v1970_v33, %v1968_v40  ;;  %v2005_v6 = vpack.c.bf16 %v1971_v62, %v1969_v54 }
 0x36b   : > { %1987 = vst [vmem:[%s3671_s24 + $0x38] sm:$0xff] %v1971_v62 }
 0x36d   : > { %v1925_v58 = vpop.f32.mrf.mxu0  ;;  %v1954_v31 = vpop.f32.mrf.mxu1 }
 0x36e   : > { %v1926_v27 = vadd.f32 %v1925_v58, %v1856_v39  ;;  %v1955_v49 = vadd.f32 %v1954_v31, %v1856_v39  ;;  %v2654_v39 = vld [vmem:[%s4413_s6 + $0x8] sm:$0xff] }
 0x370   : > { %v1972_v1 = vmax.f32 %v1926_v27, 0.0  ;;  %v1973_v60 = vmax.f32 %v1955_v49, 0.0 }
 0x372   : > { %1988 = vst [vmem:[%s3671_s24 + $0x40] sm:$0xff] %v1972_v1 }
 0x373   : > { %1989 = vst [vmem:[%s3671_s24 + $0x48] sm:$0xff] %v1973_v60 }
 0x375   : > { %v1927_v16 = vpop.f32.mrf.mxu0  ;;  %v1956_v35 = vpop.f32.mrf.mxu1 }
 0x376   : > { %v1928_v37 = vadd.f32 %v1927_v16, %v1861_v43  ;;  %v1957_v38 = vadd.f32 %v1956_v35, %v1861_v43  ;;  %v2655_v43 = vld [vmem:[%s4413_s6 + $0x10] sm:$0xff] }
 0x378   : > { %v1974_v13 = vmax.f32 %v1928_v37, 0.0  ;;  %v1975_v3 = vmax.f32 %v1957_v38, 0.0 }
 0x37a   : > { %1990 = vst [vmem:[%s3671_s24 + $0x50] sm:$0xff] %v1974_v13  ;;  %v2006_v30 = vpack.c.bf16 %v1974_v13, %v1972_v1  ;;  %v2007_v46 = vpack.c.bf16 %v1975_v3, %v1973_v60 }
 0x37b   : > { %1991 = vst [vmem:[%s3671_s24 + $0x58] sm:$0xff] %v1975_v3  ;;  %v2039_v3 = vpop.permute.xlu1 %2038 }
 0x37d   : > { %v1930_v2 = vpop.f32.mrf.mxu0  ;;  %v1959_v23 = vpop.f32.mrf.mxu1 }
 0x37e   : > { %v1931_v55 = vadd.f32 %v1930_v2, %v1866_v59  ;;  %v1960_v32 = vadd.f32 %v1959_v23, %v1866_v59 }
 0x380   : > { %v1976_v25 = vmax.f32 %v1931_v55, 0.0  ;;  %v1977_v9 = vmax.f32 %v1960_v32, 0.0 }
 0x382   : > { %1992 = vst [vmem:[%s3671_s24 + $0x60] sm:$0xff] %v1976_v25 }
 0x383   : > { %1993 = vst [vmem:[%s3671_s24 + $0x68] sm:$0xff] %v1977_v9 }
 0x385   : > { %v1932_v0 = vpop.f32.mrf.mxu0  ;;  %v1961_v56 = vpop.f32.mrf.mxu1 }
 0x386   : > { %v1933_v41 = vadd.f32 %v1932_v0, %v4156_v10  ;;  %v1962_v8 = vadd.f32 %v1961_v56, %v4156_v10  ;;  %v2653_v10 = vld [vmem:[%s4413_s6] sm:$0xff] }
 0x388   : > { %v1978_v51 = vmax.f32 %v1933_v41, 0.0  ;;  %v1979_v45 = vmax.f32 %v1962_v8, 0.0 }
 0x38a   : > { %1994 = vst [vmem:[%s3671_s24 + $0x70] sm:$0xff] %v1978_v51  ;;  %v2008_v15 = vpack.c.bf16 %v1978_v51, %v1976_v25  ;;  %v2009_v22 = vpack.c.bf16 %v1979_v45, %v1977_v9 }
 0x38b   : > { %1995 = vst [vmem:[%s3671_s24 + $0x78] sm:$0xff] %v1979_v45 }
 0x38c   : > { %2074 = vmatpush.bf16.msra.mxu2 %v2008_v15  ;;  %2098 = vmatpush.bf16.msra.mxu3 %v2009_v22 }
 0x390   : > { %2075 = vmatpush.bf16.msra.mxu2 %v2006_v30  ;;  %2099 = vmatpush.bf16.msra.mxu3 %v2007_v46  ;;  %v2044_v46 = vpop.permute.xlu2 %2043 }
 0x394   : > { %2076 = vmatpush.bf16.msra.mxu2 %v2004_v42  ;;  %2100 = vmatpush.bf16.msra.mxu3 %v2005_v6 }
 0x398   : > { %2077 = vmatpush.bf16.msra.mxu2 %v2002_v36  ;;  %2101 = vmatpush.bf16.msra.mxu3 %v2003_v4 }
 0x39b   : > { %2626 = vmatmul.msk.bf16.vlgmr.msra.gmra.mxu2 %vm1893_vm3, %v2653_v10  ;;  %2629 = vmatmul.msk.bf16.vlgmr.msra.gmra.mxu3 %vm1893_vm3, %v2653_v10 }
 0x3ab   : > { %2627 = vmatmul.msk.bf16.gmra.mxu2 %vm1893_vm3, %v2654_v39  ;;  %2630 = vmatmul.msk.bf16.gmra.mxu3 %vm1893_vm3, %v2654_v39 }
 0x3bb   : > { %2628 = vmatmul.msk.bf16.gmra.mxu2 %vm1893_vm3, %v2655_v43  ;;  %2631 = vmatmul.msk.bf16.gmra.mxu3 %vm1893_vm3, %v2655_v43 }
 0x41e   : > { %v2079_v57 = vpop.f32.mrf.mxu2  ;;  %v2103_v18 = vpop.f32.mrf.mxu3 }
 0x41f   : > { %v2080_v20 = vadd.f32 %v2079_v57, %v2019_v12  ;;  %v2104_v48 = vadd.f32 %v2103_v18, %v2019_v12 }
 0x421   : > { %2755 = vtanh.f32 %v2080_v20 }
 0x422   : > { %2757 = vtanh.f32 %v2104_v48 }
 0x426   : > { %v2081_v61 = vpop.f32.mrf.mxu2  ;;  %v2105_v52 = vpop.f32.mrf.mxu3 }
 0x427   : > { %v2756_v26 = vpop.eup %2755  ;;  %v2082_v53 = vadd.f32 %v2081_v61, %v2024_v24  ;;  %v2106_v44 = vadd.f32 %v2105_v52, %v2024_v24 }
 0x428   : > { %v2758_v50 = vpop.eup %2757  ;;  %v2238_v63 = vmul.f32 1.442695, %v2756_v26 }
 0x429   : > { %v2240_v17 = vmul.f32 1.442695, %v2758_v50  ;;  %2759 = vtanh.f32 %v2082_v53 }
 0x42a   : > { %2761 = vpow2.f32 %v2238_v63 }
 0x42b   : > { %2763 = vpow2.f32 %v2240_v17 }
 0x42c   : > { %2765 = vtanh.f32 %v2106_v44 }
 0x42e   : > { %v2084_v59 = vpop.f32.mrf.mxu2  ;;  %v2108_v11 = vpop.f32.mrf.mxu3 }
 0x42f   : > { %v2760_v21 = vpop.eup %2759  ;;  %v2085_v5 = vadd.f32 %v2084_v59, %v2029_v19  ;;  %v2109_v34 = vadd.f32 %v2108_v11, %v2029_v19 }
 0x430   : > { %v4219_v40 = vpop.eup %2761  ;;  %v2242_v54 = vmul.f32 1.442695, %v2760_v21 }
 0x431   : > { %v4221_v28 = vpop.eup %2763  ;;  %2767 = vtanh.f32 %v2085_v5 }
 0x432   : > { %v2766_v29 = vpop.eup %2765  ;;  %2769 = vpow2.f32 %v2242_v54  ;;  %v2250_v47 = vadd.f32 %v4221_v28, %v4219_v40 }
 0x433   : > { %v2244_v7 = vmul.f32 1.442695, %v2766_v29  ;;  %2771 = vtanh.f32 %v2109_v34 }
 0x434   : > { %2251 = vadd.xlane.f32.xlu0 %v2250_v47 }
 0x435   : > { %2773 = vpow2.f32 %v2244_v7 }
 0x436   : > { %v2086_v33 = vpop.f32.mrf.mxu2  ;;  %v2110_v62 = vpop.f32.mrf.mxu3 }
 0x437   : > { %v2768_v58 = vpop.eup %2767  ;;  %v2087_v31 = vadd.f32 %v2086_v33, %v2034_v14  ;;  %v2111_v27 = vadd.f32 %v2110_v62, %v2034_v14 }
 0x438   : > { %v4225_v49 = vpop.eup %2769  ;;  %v2246_v1 = vmul.f32 1.442695, %v2768_v58 }
 0x439   : > { %v2772_v60 = vpop.eup %2771  ;;  %v2632_v16 = vmul.f32 -1.442695, %v2087_v31  ;;  %v2633_v35 = vmul.f32 -1.442695, %v2111_v27 }
 0x43a   : > { %2775 = vpow2.f32 %v2246_v1  ;;  %v2248_v37 = vmul.f32 1.442695, %v2772_v60 }
 0x43b   : > { %v4227_v38 = vpop.eup %2773  ;;  %2777 = vpow2.f32 %v2632_v16 }
 0x43c   : > { %2779 = vpow2.f32 %v2248_v37  ;;  %v2253_v13 = vadd.f32 %v4227_v38, %v4225_v49 }
 0x43d   : > { %2781 = vpow2.f32 %v2633_v35 }
 0x43e   : > { %2254 = vadd.xlane.f32.xlu1 %v2253_v13  ;;  %v2089_v2 = vpop.f32.mrf.mxu2  ;;  %v2113_v23 = vpop.f32.mrf.mxu3 }
 0x43f   : > { %v2090_v55 = vadd.f32 %v2089_v2, %v2039_v3  ;;  %v2114_v32 = vadd.f32 %v2113_v23, %v2039_v3 }
 0x440   : > { %v4231_v25 = vpop.eup %2775 }
 0x441   : > { %v2778_v9 = vpop.eup %2777  ;;  %v2634_v0 = vmul.f32 -1.442695, %v2090_v55  ;;  %v2635_v56 = vmul.f32 -1.442695, %v2114_v32 }
 0x442   : > { %v4233_v41 = vpop.eup %2779  ;;  %v2142_v8 = vadd.f32 1.0, %v2778_v9 }
 0x443   : > { %v2782_v51 = vpop.eup %2781  ;;  %2783 = vpow2.f32 %v2634_v0  ;;  %v2256_v45 = vadd.f32 %v4233_v41, %v4231_v25 }
 0x444   : > { %2785 = vrcp.f32 %v2142_v8  ;;  %v2143_v15 = vadd.f32 1.0, %v2782_v51  ;;  %v2159_v24 = vand.u32 2147483648, %v2142_v8  ;;  %v2157_v26 = vand.u32 2147483647, %v2142_v8 }
 0x445   : > { %2787 = vpow2.f32 %v2635_v56  ;;  %2257 = vadd.xlane.f32.xlu2 %v2256_v45  ;;  %vm2153_vm7 = vweird.f32 %v2142_v8 }
 0x446   : > { %v2091_v22 = vpop.f32.mrf.mxu2  ;;  %v2115_v30 = vpop.f32.mrf.mxu3  ;;  %2789 = vrcp.f32 %v2143_v15  ;;  %v2174_v63 = vand.u32 2147483648, %v2143_v15  ;;  %v2160_v17 = vor.u32 1.1754944e-38, %v2159_v24  ;;  %v2172_v59 = vand.u32 2147483647, %v2143_v15 }
 0x447   : > { %v2092_v42 = vadd.f32 %v2091_v22, %v2044_v46  ;;  %v2116_v6 = vadd.f32 %v2115_v30, %v2044_v46  ;;  %vm2158_vm10 = vcmp.eq.f32.partialorder %v2157_v26, 8.507059e+37  ;;  %vm2168_vm11 = vweird.f32 %v2143_v15 }
 0x448   : > { %v2175_v7 = vor.u32 1.1754944e-38, %v2174_v63  ;;  %vm2173_vm13 = vcmp.eq.f32.partialorder %v2172_v59, 8.507059e+37 }
 0x449   : > { %v2784_v36 = vpop.eup %2783  ;;  %v2636_v39 = vmul.f32 -1.442695, %v2092_v42  ;;  %v2637_v57 = vmul.f32 -1.442695, %v2116_v6 }
 0x44a   : > { %v2786_v4 = vpop.eup %2785  ;;  %v4237_v10 = vadd.f32 1.0, %v2784_v36 }
 0x44b   : > { %v2788_v43 = vpop.eup %2787  ;;  %v2149_v12 = vmul.f32 %v2786_v4, %v2142_v8  ;;  %vm2154_vm4 = vweird.f32 %v2786_v4 }
 0x44c   : > { %2791 = vrcp.f32 %v4237_v10  ;;  %v2790_v18 = vpop.eup %2789  ;;  %v4240_v48 = vadd.f32 1.0, %v2788_v43  ;;  %vm2155_vm8 = vmor %vm2153_vm7, %vm2154_vm4  ;;  %v2189_v33 = vand.u32 2147483648, %v4237_v10  ;;  %v2187_v60 = vand.u32 2147483647, %v4237_v10 }
 0x44d   : > { %v2150_v20 = vsub.f32 1.0, %v2149_v12  ;;  %2793 = vpow2.f32 %v2636_v39  ;;  %v2164_v61 = vmul.f32 %v2790_v18, %v2143_v15  ;;  %vm2169_vm9 = vweird.f32 %v2790_v18 }
 0x44e   : > { %2795 = vrcp.f32 %v4240_v48  ;;  %vm2170_vm12 = vmor %vm2168_vm11, %vm2169_vm9  ;;  %vm2183_vm15 = vweird.f32 %v4237_v10  ;;  %v2190_v13 = vor.u32 1.1754944e-38, %v2189_v33  ;;  %v2204_v3 = vand.u32 2147483648, %v4240_v48 }
 0x44f   : > { %v2151_v52 = vmul.f32 %v2786_v4, %v2150_v20  ;;  %v2165_v53 = vsub.f32 1.0, %v2164_v61  ;;  %2797 = vpow2.f32 %v2637_v57  ;;  %v2202_v23 = vand.u32 2147483647, %v4240_v48 }
 0x450   : > { %vm2188_vm2 = vcmp.eq.f32.partialorder %v2187_v60, 8.507059e+37  ;;  %vm2198_vm5 = vweird.f32 %v4240_v48  ;;  %v2205_v56 = vor.u32 1.1754944e-38, %v2204_v3 }
 0x451   : > { %v2152_v50 = vadd.f32 %v2786_v4, %v2151_v52  ;;  %v2166_v19 = vmul.f32 %v2790_v18, %v2165_v53  ;;  %vm2203_vm3 = vcmp.eq.f32.partialorder %v2202_v23, 8.507059e+37 }
 0x452   : > { %v2792_v44 = vpop.eup %2791 }
 0x453   : > { %v2794_v11 = vpop.eup %2793  ;;  %v2156_v21 = vsel %vm2155_vm8, %v2786_v4, %v2152_v50  ;;  %v2179_v5 = vmul.f32 %v2792_v44, %v4237_v10  ;;  %v2167_v54 = vadd.f32 %v2790_v18, %v2166_v19  ;;  %vm2184_vm14 = vweird.f32 %v2792_v44 }
 0x454   : > { %v2161_v34 = vsel %vm2158_vm10, %v2160_v17, %v2156_v21  ;;  %v2146_v29 = vadd.f32 1.0, %v2794_v11  ;;  %v2796_v47 = vpop.eup %2795  ;;  %vm2185_vm0 = vmor %vm2183_vm15, %vm2184_vm14 }
 0x455   : > { %2274 = vst [vmem:[%s3679_s21] sm:$0xff] %v2161_v34  ;;  %v2180_v14 = vsub.f32 1.0, %v2179_v5  ;;  %v2798_v62 = vpop.eup %2797  ;;  %v2171_v58 = vsel %vm2170_vm12, %v2790_v18, %v2167_v54  ;;  %v2194_v31 = vmul.f32 %v2796_v47, %v4240_v48  ;;  %vm2199_vm1 = vweird.f32 %v2796_v47 }
 0x456   : > { %2799 = vrcp.f32 %v2146_v29  ;;  %v2176_v27 = vsel %vm2173_vm13, %v2175_v7, %v2171_v58  ;;  %v2147_v35 = vadd.f32 1.0, %v2798_v62  ;;  %vm2200_vm6 = vmor %vm2198_vm5, %vm2199_vm1  ;;  %v2217_v30 = vand.u32 2147483647, %v2146_v29 }
 0x457   : > { %v2181_v1 = vmul.f32 %v2792_v44, %v2180_v14  ;;  %2275 = vst [vmem:[%s3679_s21 + $0x8] sm:$0xff] %v2176_v27  ;;  %v2195_v16 = vsub.f32 1.0, %v2194_v31  ;;  %v2219_v46 = vand.u32 2147483648, %v2146_v29  ;;  %vm2213_vm7 = vweird.f32 %v2146_v29 }
 0x458   : > { %2801 = vrcp.f32 %v2147_v35  ;;  %vm2218_vm9 = vcmp.eq.f32.partialorder %v2217_v30, 8.507059e+37  ;;  %v2234_v39 = vand.u32 2147483648, %v2147_v35  ;;  %v2232_v57 = vand.u32 2147483647, %v2147_v35 }
 0x459   : > { %v2182_v37 = vadd.f32 %v2792_v44, %v2181_v1  ;;  %v2196_v2 = vmul.f32 %v2796_v47, %v2195_v16  ;;  %v2220_v10 = vor.u32 1.1754944e-38, %v2219_v46  ;;  %vm2228_vm11 = vweird.f32 %v2147_v35 }
 0x45a   : > { %v2235_v48 = vor.u32 1.1754944e-38, %v2234_v39  ;;  %vm2233_vm13 = vcmp.eq.f32.partialorder %v2232_v57, 8.507059e+37 }
 0x45b   : > { %v2186_v55 = vsel %vm2185_vm0, %v2792_v44, %v2182_v37  ;;  %v2197_v0 = vadd.f32 %v2796_v47, %v2196_v2 }
 0x45c   : > { %v2800_v32 = vpop.eup %2799  ;;  %v2191_v9 = vsel %vm2188_vm2, %v2190_v13, %v2186_v55 }
 0x45d   : > { %2276 = vst [vmem:[%s3679_s21 + $0x10] sm:$0xff] %v2191_v9  ;;  %v2209_v8 = vmul.f32 %v2800_v32, %v2146_v29  ;;  %v2201_v51 = vsel %vm2200_vm6, %v2796_v47, %v2197_v0  ;;  %vm2214_vm4 = vweird.f32 %v2800_v32 }
 0x45e   : > { %v2206_v45 = vsel %vm2203_vm3, %v2205_v56, %v2201_v51  ;;  %v2802_v22 = vpop.eup %2801  ;;  %vm2215_vm8 = vmor %vm2213_vm7, %vm2214_vm4 }
 0x45f   : > { %v2210_v15 = vsub.f32 1.0, %v2209_v8  ;;  %2277 = vst [vmem:[%s3679_s21 + $0x18] sm:$0xff] %v2206_v45  ;;  %v2224_v6 = vmul.f32 %v2802_v22, %v2147_v35  ;;  %vm2229_vm10 = vweird.f32 %v2802_v22 }
 0x460   : > { %vm2230_vm12 = vmor %vm2228_vm11, %vm2229_vm10 }
 0x461   : > { %v2211_v42 = vmul.f32 %v2800_v32, %v2210_v15  ;;  %v2225_v4 = vsub.f32 1.0, %v2224_v6 }
 0x463   : > { %v2212_v36 = vadd.f32 %v2800_v32, %v2211_v42  ;;  %v2226_v12 = vmul.f32 %v2802_v22, %v2225_v4 }
 0x465   : > { %v2216_v43 = vsel %vm2215_vm8, %v2800_v32, %v2212_v36  ;;  %v2227_v20 = vadd.f32 %v2802_v22, %v2226_v12 }
 0x466   : > { %v2221_v18 = vsel %vm2218_vm9, %v2220_v10, %v2216_v43 }
 0x467   : > { %2278 = vst [vmem:[%s3679_s21 + $0x20] sm:$0xff] %v2221_v18  ;;  %v2231_v24 = vsel %vm2230_vm12, %v2802_v22, %v2227_v20 }
 0x468   : > { %v2236_v61 = vsel %vm2233_vm13, %v2235_v48, %v2231_v24 }
 0x469   : > { %2279 = vst [vmem:[%s3679_s21 + $0x28] sm:$0xff] %v2236_v61 }
 0x4a7   : > { %v2252_v52 = vpop.xlane.xlu0 %2251 }
 0x4a8   : > { %2803 = vrcp.f32 %v2252_v52 }
 0x4ae   : > { %v2804_v26 = vpop.eup %2803 }
 0x4af   : > { %v2262_v53 = vmul.f32 %v2804_v26, %v4219_v40  ;;  %v2263_v50 = vmul.f32 %v2804_v26, %v4221_v28 }
 0x4b1   : > { %2268 = vst [vmem:[%s3675_s12] sm:$0xff] %v2262_v53  ;;  %v2255_v63 = vpop.xlane.xlu1 %2254 }
 0x4b2   : > { %2269 = vst [vmem:[%s3675_s12 + $0x8] sm:$0xff] %v2263_v50  ;;  %2805 = vrcp.f32 %v2255_v63 }
 0x4b8   : > { %v2806_v44 = vpop.eup %2805  ;;  %v2258_v17 = vpop.xlane.xlu2 %2257 }
 0x4b9   : > { %v2264_v19 = vmul.f32 %v2806_v44, %v4225_v49  ;;  %v2265_v59 = vmul.f32 %v2806_v44, %v4227_v38  ;;  %2807 = vrcp.f32 %v2258_v17 }
 0x4bb   : > { %2270 = vst [vmem:[%s3675_s12 + $0x10] sm:$0xff] %v2264_v19 }
 0x4bc   : > { %2271 = vst [vmem:[%s3675_s12 + $0x18] sm:$0xff] %v2265_v59 }
 0x4bf   : > { %v2808_v11 = vpop.eup %2807 }
 0x4c0   : > { %v2266_v40 = vmul.f32 %v2808_v11, %v4231_v25  ;;  %v2267_v21 = vmul.f32 %v2808_v11, %v4233_v41 }
 0x4c2   : > { %2272 = vst [vmem:[%s3675_s12 + $0x20] sm:$0xff] %v2266_v40 }
 0x4c3   : > { %2273 = vst [vmem:[%s3675_s12 + $0x28] sm:$0xff] %v2267_v21 }
 0x4c4 PF: > { %s4414_s23 = sadd.s32 4294967295, %s2963_s20   ;;  %s2658_s22 = smul.u32 48, %s2951_s17 }
 0x4c5   : > { %s4271_s11 = sand.u32 1, %s4414_s23   ;;  %s2320_s27 = sshll.u32 %s3675_s12, 4  ;;  %s2321_s27 = int_to_ptr.vmem [resolvable:$true] %s2320_s27 }
 0x4c6   : > { %s2319_s16 = scalar_lea.hbm %s4375_s9, %s2658_s22  ;;  %s2656_s18 = sshll.u32 %s2951_s17, 7 }
 0x4c7   : > { %s2322_s29 = sshll.u32 %s2319_s16, 4  ;;  %s2302_s2 = scalar_lea.hbm %s4374_s8, %s2656_s18  ;;  %s2323_s29 = int_to_ptr.hbm [resolvable:$true] %s2322_s29 }
 0x4c8   : > { %s2303_s3 = sshll.u32 %s3671_s24, 4  ;;  %s2286_s4 = scalar_lea.sflag [#allocation6], %s4271_s11  ;;  %s2304_s3 = int_to_ptr.vmem [resolvable:$true] %s2303_s3 }
 0x4c9   : > { %s2823_s23 = sshra.s32 %s2323_s29, 4  ;;  %s2829_s0 = scalar_lea.hbm %s4375_s9, 96  ;;  %s2824_s23 = int_to_ptr.hbm [resolvable:$true] %s2823_s23 }
 0x4ca   : > { %s2825_s5 = scalar_lea.hbm %s2824_s23, 48  ;;  %p2830_p8 = scmp.lt.s32.totalorder %s2824_s23, %s4375_s9 }
 0x4cb   : > { %p2826_p5 = scmp.ne.s32.totalorder %s2824_s23, %s2825_s5  ;;  %p2831_p10 = scmp.lt.s32.totalorder %s2829_s0, %s2825_s5 }
 0x4cd   : > { %p2827_p6 = pnand %p2826_p5, %p3079_p3  ;;  %p2832_p11 = por %p2831_p10, %p2830_p8 }
 0x4cf   : > { %p2828_p7 = pneg %p2827_p6 }
 0x4d1   : > { %p2833_p12 = pnand %p2832_p11, %p2828_p7 }
 0x4d3   : > { %2836 = shalt.err (!%p2833_p12)
}
 0x4d4   : > { %s2971_s1 = smov 256   ;;  %s2972_s24 = smov 16  }
 0x4d5   : > { %2661 = dma.vmem_to_hbm [thread:$0]  (%p3079_p3), %s2321_s27, 768, %s2323_s29, %s2286_s4, %s2971_s1, %s2971_s1, %s2972_s24  }
 0x4d6   : > { %s2305_s6 = sshll.u32 %s2302_s2, 4  ;;  %s2336_s19 = scalar_lea.hbm %s4376_s10, %s2658_s22  ;;  %s2306_s6 = int_to_ptr.hbm [resolvable:$true] %s2305_s6 }
 0x4d7   : > { %s2281_s23 = scalar_lea.sflag [#allocation4], %s3102_s30  ;;  %s2851_s12 = sshra.s32 %s2306_s6, 4  ;;  %s2852_s12 = int_to_ptr.hbm [resolvable:$true] %s2851_s12 }
 0x4d8   : > { %s2853_s0 = scalar_lea.hbm %s2852_s12, 128  ;;  %s2857_s27 = scalar_lea.hbm %s4374_s8, 256 }
 0x4d9   : > { %p2854_p13 = scmp.ne.s32.totalorder %s2852_s12, %s2853_s0  ;;  %p2858_p2 = scmp.lt.s32.totalorder %s2852_s12, %s4374_s8 }
 0x4da   : > { %p2859_p4 = scmp.lt.s32.totalorder %s2857_s27, %s2853_s0 }
 0x4db   : > { %p2855_p0 = pnand %p2854_p13, %p3079_p3 }
 0x4dc   : > { %p2860_p5 = por %p2859_p4, %p2858_p2 }
 0x4dd   : > { %p2856_p1 = pneg %p2855_p0 }
 0x4df   : > { %p2861_p6 = pnand %p2860_p5, %p2856_p1 }
 0x4e1   : > { %2864 = shalt.err (!%p2861_p6)
}
 0x4e2   : > { %2660 = dma.vmem_to_hbm [thread:$0]  (%p3079_p3), %s2304_s3, 2048, %s2306_s6, %s2281_s23, %s2971_s1, %s2971_s1, %s2972_s24  }
 0x4e3   : > { %s2337_s17 = sshll.u32 %s3679_s21, 4  ;;  %s2339_s30 = sshll.u32 %s2336_s19, 4  ;;  %s2338_s17 = int_to_ptr.vmem [resolvable:$true] %s2337_s17  ;;  %s2340_s30 = int_to_ptr.hbm [resolvable:$true] %s2339_s30 }
 0x4e4   : > { %s2879_s22 = sshra.s32 %s2340_s30, 4  ;;  %s2885_s0 = scalar_lea.hbm %s4376_s10, 96  ;;  %s2880_s22 = int_to_ptr.hbm [resolvable:$true] %s2879_s22 }
 0x4e5   : > { %s2881_s5 = scalar_lea.hbm %s2880_s22, 48  ;;  %p2886_p11 = scmp.lt.s32.totalorder %s2880_s22, %s4376_s10 }
 0x4e6   : > { %p2882_p7 = scmp.ne.s32.totalorder %s2880_s22, %s2881_s5  ;;  %p2887_p12 = scmp.lt.s32.totalorder %s2885_s0, %s2881_s5 }
 0x4e8   : > { %p2883_p8 = pnand %p2882_p7, %p3079_p3  ;;  %p2888_p13 = por %p2887_p12, %p2886_p11 }
 0x4ea   : > { %p2884_p10 = pneg %p2883_p8 }
 0x4ec   : > { %p2889_p0 = pnand %p2888_p13, %p2884_p10 }
 0x4ee   : > { %2892 = shalt.err (!%p2889_p0)
}
 0x4ef   : > { %2662 = dma.vmem_to_hbm [thread:$0]  (%p3079_p3), %s2338_s17, 768, %s2340_s30, %s2286_s4, %s2971_s1, %s2971_s1, %s2972_s24  }
 0x4f0 PF: > { %p2676_p1 = scmp.ge.s32.totalorder %s2963_s20, 2  ;;  %s2354_s3 = sand.u32 1, %s2935_s13  }
 0x4f1   : > { %s2355_s21 = scalar_lea.sflag [#allocation4], %s2354_s3 }
 0x4f2   : > { %p2667_p2 = pnand %p2676_p1, %p3091_p9 }
 0x4f4   : > { %p2668_p4 = pneg %p2667_p2 }
 0x4f6   : > { %2926 = dma.done.wait (%p2668_p4), %s2355_s21, 2048  }
 0x4f7   : > { %2928 = vsyncadd (%p2668_p4), %s2355_s21, 4294965248  ;;  %s4415_s25 = sadd.s32 4294967294, %s2963_s20  }
 0x4f8   : > { %s2364_s6 = sand.u32 1, %s4415_s25  }
 0x4f9   : > { %s2365_s19 = scalar_lea.sflag [#allocation6], %s2364_s6 }
 0x4fa   : > { %2930 = dma.done.wait (%p2668_p4), %s2365_s19, 1536  }
 0x4fb   : > { %2932 = vsyncadd (%p2668_p4), %s2365_s19, 4294965760  ;;  %s27_s20 = sadd.s32 1, %s2963_s20   ;;  %s4416_s4 = sld [smem:[#allocation14_spill]] }
 0x4fc   : > { %p24_p3 = scmp.ge.s32.totalorder %s27_s20, 6   ;;  %s4417_s16 = sld [smem:[#allocation10_spill]] }
 0x4fd   : > { %s4418_s17 = sld [smem:[#allocation11_spill]]  ;;  %s4421_s13 = smov %s2939_s14 }
 0x4fe   : > { %s4419_s18 = sld [smem:[#allocation12_spill]]  ;;  %s4422_s14 = smov %s2943_s15 }
 0x4ff   : > { %s4420_s19 = sld [smem:[#allocation13_spill]]  ;;  %26 = sbr.rel (!%p24_p3) target bundleno = 15 (0xf), region = 137 }
 0x501   : > { %s4423_s15 = smov %s4416_s4 }
 0x504   :  { %2381 = vsyncpa [#allocation4], 1 }
 0x505   :  { %2383 = vsyncpa [#allocation4 + $0x1], 1 }
 0x506   :  { %2384 = vsyncpa [#allocation6], 1 }
 0x507   :  { %2386 = vsyncpa [#allocation6 + $0x1], 1 }

</bundles_post_ra>
